<compile_context>
chip_gen: v7x
topology: tpu7x:2x2x1
jax: 0.10.0
libtpu: 0.0.40
codegen_flags: <defaults>
</compile_context>

<pallas_src>
import jax
import jax.numpy as jnp
from jax.experimental import pallas as pl
from jax.experimental.pallas import tpu as pltpu

# ---- sizes (small, consistent with the module: config.hidden=32, Dense hidden=128) ----
B = 8        # batch
H = 32       # config.hidden
DH = 128     # Dense hidden width (hard-coded 128 in the PyTorch module)
V = 4        # number of classification heads (labels1..4)
C = 2        # classes per head
LA = 16      # app_behave sequence length (post-encoder)
LB = 16      # app_list sequence length (post-encoder)
LT = LA + LB

# ---- slab layouts ----
FS_W = 512                            # f32 meta+bias slab width (>= V*DH)
DW1_C0 = 0                            # dense  W1 [4H,128]  cols [0,128)
DW2_C0 = DH                           # dense  W2 [128,32]  cols [128,160)
HW1_C0 = 2 * DH                       # heads  W1 [32,512]  cols [256,768)
HW2_C0 = 2 * DH + V * DH              # heads  W2 [512,8]   cols [768,776)
WS_W = HW2_C0 + V * C                 # 776
Y_OFF, HID_OFF, LOSS_OFF = 0, V * C, V * C + H
OUT_W = LOSS_OFF + 8                  # [logits(8) | hidden(32) | loss bcast(8)]


def _gelu(x):
    # exact GeLU formula from the PyTorch module (kept in f32)
    return 0.5 * x * (1.0 + jnp.tanh(x * 0.7978845608 * (1.0 + 0.044715 * x * x)))


def head_kernel(seq_ref, fs_ref, w_ref, out_ref):
    f32, bf16 = jnp.float32, jnp.bfloat16

    # ---- unpack the f32 meta/bias slab (static slices, no extra DMAs) -----
    mask_a = fs_ref[0:B, 0:LA]                 # [B, LA]
    mask_b = fs_ref[0:B, LA:LT]                # [B, LB]
    labels_f = fs_ref[0:B, LT:LT + V]          # [B, V]  (0.0 / 1.0)
    bias = fs_ref[B:2 * B, :]                  # [8, FS_W] bias band
    db1 = bias[0:1, 0:DH]                      # [1, 128]
    db2 = bias[1:2, 0:H]                       # [1, 32]
    hb1 = bias[2:3, 0:V * DH]                  # [1, 512]
    hb2 = bias[3:4, 0:V * C]                   # [1, 8]

    # ---- masked maxpool over the two sequences ----------------------------
    NEG = jnp.float32(-1e9)                    # finite fill: no NaN if a row is all-masked
    a = jnp.max(jnp.where(mask_a[:, :, None] > 0.0, seq_ref[:, 0:LA, :], NEG), axis=1)
    b = jnp.max(jnp.where(mask_b[:, :, None] > 0.0, seq_ref[:, LA:LT, :], NEG), axis=1)

    # ---- Dense(4H -> 128 -> H) on [a, b, |a-b|, a*b] -----------------------
    feat = jnp.concatenate([a, b, jnp.abs(a - b), a * b], axis=-1)      # [B, 4H]
    h1 = _gelu(jnp.dot(feat.astype(bf16), w_ref[0:4 * H, DW1_C0:DW1_C0 + DH],
                       preferred_element_type=f32) + db1)               # [B, 128]
    hidden = jnp.dot(h1.astype(bf16), w_ref[0:DH, DW2_C0:DW2_C0 + H],
                     preferred_element_type=f32) + db2                  # [B, 32]

    # ---- four classification heads, fused into two matmuls ----------------
    g1 = _gelu(jnp.dot(hidden.astype(bf16), w_ref[0:H, HW1_C0:HW1_C0 + V * DH],
                       preferred_element_type=f32) + hb1)               # [B, 512]
    logits = jnp.dot(g1.astype(bf16), w_ref[0:V * DH, HW2_C0:HW2_C0 + V * C],
                     preferred_element_type=f32) + hb2                  # [B, 8]

    # ---- summed cross-entropy (per-head math on register-resident values) -
    total = jnp.float32(0.0)
    for t in range(V):                                   # 4x tiny VPU work, no stores
        lg = logits[:, C * t:C * (t + 1)]                # [B, 2]
        lbl = labels_f[:, t:t + 1]                       # [B, 1]
        m = jnp.max(lg, axis=-1, keepdims=True)
        lse = m + jnp.log(jnp.sum(jnp.exp(lg - m), axis=-1, keepdims=True))
        cls = jax.lax.broadcasted_iota(jnp.int32, lg.shape, 1).astype(f32)
        onehot = (cls == lbl).astype(f32)
        nll = jnp.sum(onehot * (lse - lg), axis=-1, keepdims=True)      # [B, 1]
        total = total + jnp.sum(nll) * jnp.float32(1.0 / B)

    # ---- single lane-dense output store: [logits | hidden | loss] ---------
    loss_tile = jnp.zeros((B, OUT_W - LOSS_OFF), f32) + total
    out_ref[...] = jnp.concatenate([logits, hidden, loss_tile], axis=-1)


def pack_params(params):
    """Layout plumbing only (no compute hoisting): pack weights/biases into slabs."""
    dw1, db1, dw2, db2, hw1, hb1, hw2, hb2 = params
    hw1_all = jnp.transpose(hw1, (1, 0, 2)).reshape(H, V * DH)          # [32, 512]
    hb1_all = hb1.reshape(V * DH)
    hw2_blk = jnp.zeros((V * DH, V * C), jnp.float32)                   # block-diagonal
    for t in range(V):
        hw2_blk = hw2_blk.at[t * DH:(t + 1) * DH, t * C:(t + 1) * C].set(hw2[t])
    hb2_all = hb2.reshape(V * C)

    w = jnp.zeros((V * DH, WS_W), jnp.float32)
    w = w.at[0:4 * H, DW1_C0:DW1_C0 + DH].set(dw1)
    w = w.at[0:DH, DW2_C0:DW2_C0 + H].set(dw2)
    w = w.at[0:H, HW1_C0:HW1_C0 + V * DH].set(hw1_all)
    w = w.at[:, HW2_C0:HW2_C0 + V * C].set(hw2_blk)
    wslab = w.astype(jnp.bfloat16)                                      # bf16 MXU operands

    bias_band = jnp.zeros((B, FS_W), jnp.float32)
    bias_band = bias_band.at[0, 0:DH].set(db1)
    bias_band = bias_band.at[1, 0:H].set(db2)
    bias_band = bias_band.at[2, 0:V * DH].set(hb1_all)
    bias_band = bias_band.at[3, 0:V * C].set(hb2_all)
    return wslab, bias_band


def forward(a_seq, b_seq, mask_a, mask_b, labels, params):
    """Returns (loss, y[V,B,C], hidden[B,H]) like the module's (loss, y1..4, hidden)."""
    wslab, bias_band = pack_params(params)
    seq = jnp.concatenate([a_seq, b_seq], axis=1)                       # [B, LT, H]
    meta = jnp.zeros((B, FS_W), jnp.float32)
    meta = meta.at[:, 0:LA].set(mask_a)
    meta = meta.at[:, LA:LT].set(mask_b)
    meta = meta.at[:, LT:LT + V].set(labels.astype(jnp.float32))
    fslab = jnp.concatenate([meta, bias_band], axis=0)                  # [2B, FS_W]

    out = pl.pallas_call(
        head_kernel,
        out_shape=jax.ShapeDtypeStruct((B, OUT_W), jnp.float32),
        grid_spec=pltpu.PrefetchScalarGridSpec(
            num_scalar_prefetch=0,
            grid=(1,),   # single micro-batch; use a leading "parallel" axis to batch many
            in_specs=[
                pl.BlockSpec((B, LT, H), lambda i: (0, 0, 0)),
                pl.BlockSpec((2 * B, FS_W), lambda i: (0, 0)),
                pl.BlockSpec((V * DH, WS_W), lambda i: (0, 0)),
            ],
            out_specs=pl.BlockSpec((B, OUT_W), lambda i: (0, 0)),
        ),
        compiler_params=pltpu.CompilerParams(
            dimension_semantics=("arbitrary",)),
    )(seq, fslab, wslab)

    y_flat = out[:, Y_OFF:Y_OFF + V * C]
    hidden = out[:, HID_OFF:HID_OFF + H]
    loss = out[0, LOSS_OFF]
    y = jnp.transpose(y_flat.reshape(B, V, C), (1, 0, 2))               # [V, B, C]
    return loss, y, hidden


def init_params(key):
    ks = jax.random.split(key, 8)

    def xavier(k, shape):
        fan_in, fan_out = shape[-2], shape[-1]
        lim = jnp.sqrt(6.0 / (fan_in + fan_out))
        return jax.random.uniform(k, shape, jnp.float32, -lim, lim)

    dw1 = xavier(ks[0], (4 * H, DH))
    db1 = 0.05 * jax.random.normal(ks[1], (DH,), jnp.float32)
    dw2 = xavier(ks[2], (DH, H))
    db2 = 0.05 * jax.random.normal(ks[3], (H,), jnp.float32)
    hw1 = xavier(ks[4], (V, H, DH))
    hb1 = 0.05 * jax.random.normal(ks[5], (V, DH), jnp.float32)
    hw2 = xavier(ks[6], (V, DH, C))
    hb2 = 0.05 * jax.random.normal(ks[7], (V, C), jnp.float32)
    return (dw1, db1, dw2, db2, hw1, hb1, hw2, hb2)


def reference(a_seq, b_seq, mask_a, mask_b, labels, params):
    """Pure f32 JAX reference of the same module head."""
    dw1, db1, dw2, db2, hw1, hb1, hw2, hb2 = params
    a = jnp.max(jnp.where(mask_a[:, :, None] > 0, a_seq, -jnp.inf), axis=1)
    b = jnp.max(jnp.where(mask_b[:, :, None] > 0, b_seq, -jnp.inf), axis=1)
    feat = jnp.concatenate([a, b, jnp.abs(a - b), a * b], axis=-1)
    hidden = _gelu(feat @ dw1 + db1) @ dw2 + db2
    total = 0.0
    ys = []
    for t in range(V):
        lg = _gelu(hidden @ hw1[t] + hb1[t]) @ hw2[t] + hb2[t]
        ys.append(lg)
        logp = jax.nn.log_softmax(lg, axis=-1)
        total = total + jnp.mean(-jnp.take_along_axis(logp, labels[:, t:t + 1], axis=-1))
    return total, jnp.stack(ys, 0), hidden


if __name__ == "__main__":
    key = jax.random.PRNGKey(0)
    k1, k2, k3, k4, k5, k6 = jax.random.split(key, 6)

    # synthetic post-encoder fused sequence features + valid-length masks
    a_seq = jax.random.normal(k1, (B, LA, H), jnp.float32)
    b_seq = jax.random.normal(k2, (B, LB, H), jnp.float32)
    a_len = jax.random.randint(k3, (B,), 1, LA + 1)
    b_len = jax.random.randint(k4, (B,), 1, LB + 1)
    mask_a = (jnp.arange(LA)[None, :] < a_len[:, None]).astype(jnp.float32)
    mask_b = (jnp.arange(LB)[None, :] < b_len[:, None]).astype(jnp.float32)
    labels = jax.random.randint(k5, (B, V), 0, C, jnp.int32)
    params = init_params(k6)

    fwd = jax.jit(forward)
    loss, y, hidden = fwd(a_seq, b_seq, mask_a, mask_b, labels, params)
    loss = jax.block_until_ready(loss)
    y = jax.block_until_ready(y)
    hidden = jax.block_until_ready(hidden)

    ref_loss, ref_y, ref_hidden = reference(a_seq, b_seq, mask_a, mask_b, labels, params)
    assert jnp.isfinite(loss), "loss not finite"
    # tolerances loosened vs pure-f32 reference because matmul operands are bf16 (per review)
    assert jnp.allclose(loss, ref_loss, atol=5e-2, rtol=5e-2), (loss, ref_loss)
    assert jnp.allclose(y, ref_y, atol=1e-1, rtol=5e-2)
    assert jnp.allclose(hidden, ref_hidden, atol=1e-1, rtol=5e-2)

    print("KERNEL_OK")
</pallas_src>

<mosaic_0001>
module attributes {stable_mosaic.version = 11 : i64} {
  func.func @head_kernel(%arg0: i32, %arg1: memref<8x32x32xf32, #tpu.memory_space<vmem>>, %arg2: memref<16x512xf32, #tpu.memory_space<vmem>>, %arg3: memref<512x776xbf16, #tpu.memory_space<vmem>>, %arg4: memref<8x48xf32, #tpu.memory_space<vmem>>) attributes {dimension_semantics = [#tpu.dimension_semantics<arbitrary>], iteration_bounds = array<i64: 1>, scalar_prefetch = 0 : i64, scratch_operands = 0 : i64, tpu.core_type = #tpu.core_type<tc>, window_params = [{pipeline_mode = #tpu.pipeline_mode<synchronous>, transform_indices = @transform_0, window_bounds = array<i64: 8, 32, 32>}, {pipeline_mode = #tpu.pipeline_mode<synchronous>, transform_indices = @transform_1, window_bounds = array<i64: 16, 512>}, {pipeline_mode = #tpu.pipeline_mode<synchronous>, transform_indices = @transform_2, window_bounds = array<i64: 512, 776>}, {pipeline_mode = #tpu.pipeline_mode<synchronous>, transform_indices = @transform_3, window_bounds = array<i64: 8, 48>}]} {
    %c0 = arith.constant 0 : index
    %c0_0 = arith.constant 0 : index
    %0 = vector.load %arg2[%c0, %c0_0] : memref<16x512xf32, #tpu.memory_space<vmem>>, vector<8x16xf32>
    %c0_1 = arith.constant 0 : index
    %c16 = arith.constant 16 : index
    %1 = vector.load %arg2[%c0_1, %c16] : memref<16x512xf32, #tpu.memory_space<vmem>>, vector<8x16xf32>
    %c0_2 = arith.constant 0 : index
    %c32 = arith.constant 32 : index
    %2 = vector.load %arg2[%c0_2, %c32] : memref<16x512xf32, #tpu.memory_space<vmem>>, vector<8x4xf32>
    %c8 = arith.constant 8 : index
    %c0_3 = arith.constant 0 : index
    %3 = vector.load %arg2[%c8, %c0_3] : memref<16x512xf32, #tpu.memory_space<vmem>>, vector<8x512xf32>
    %4 = vector.extract_strided_slice %3 {offsets = [0, 0], sizes = [1, 128], strides = [1, 1]} : vector<8x512xf32> to vector<1x128xf32>
    %5 = vector.extract_strided_slice %3 {offsets = [1, 0], sizes = [1, 32], strides = [1, 1]} : vector<8x512xf32> to vector<1x32xf32>
    %6 = vector.extract_strided_slice %3 {offsets = [2, 0], sizes = [1, 512], strides = [1, 1]} : vector<8x512xf32> to vector<1x512xf32>
    %7 = vector.extract_strided_slice %3 {offsets = [3, 0], sizes = [1, 8], strides = [1, 1]} : vector<8x512xf32> to vector<1x8xf32>
    %8 = vector.shape_cast %0 : vector<8x16xf32> to vector<8x16x1xf32>
    %cst = arith.constant 0.000000e+00 : f32
    %9 = vector.broadcast %cst : f32 to vector<8x16x1xf32>
    %10 = arith.cmpf ogt, %8, %9 : vector<8x16x1xf32>
    %c0_4 = arith.constant 0 : index
    %c0_5 = arith.constant 0 : index
    %c0_6 = arith.constant 0 : index
    %11 = vector.load %arg1[%c0_4, %c0_5, %c0_6] : memref<8x32x32xf32, #tpu.memory_space<vmem>>, vector<8x16x32xf32>
    %cst_7 = arith.constant -1.000000e+09 : f32
    %12 = vector.shape_cast %10 : vector<8x16x1xi1> to vector<8x16x1xi1>
    %13 = vector.broadcast %12 : vector<8x16x1xi1> to vector<8x16x32xi1>
    %14 = vector.broadcast %cst_7 : f32 to vector<8x16x32xf32>
    %15 = arith.select %13, %11, %14 : vector<8x16x32xi1>, vector<8x16x32xf32>
    %cst_8 = arith.constant dense<0xFF800000> : vector<8x32xf32>
    %16 = vector.multi_reduction <maximumf>, %15, %cst_8 [1] : vector<8x16x32xf32> to vector<8x32xf32>
    %17 = vector.shape_cast %1 : vector<8x16xf32> to vector<8x16x1xf32>
    %cst_9 = arith.constant 0.000000e+00 : f32
    %18 = vector.broadcast %cst_9 : f32 to vector<8x16x1xf32>
    %19 = arith.cmpf ogt, %17, %18 : vector<8x16x1xf32>
    %c0_10 = arith.constant 0 : index
    %c16_11 = arith.constant 16 : index
    %c0_12 = arith.constant 0 : index
    %20 = vector.load %arg1[%c0_10, %c16_11, %c0_12] : memref<8x32x32xf32, #tpu.memory_space<vmem>>, vector<8x16x32xf32>
    %cst_13 = arith.constant -1.000000e+09 : f32
    %21 = vector.shape_cast %19 : vector<8x16x1xi1> to vector<8x16x1xi1>
    %22 = vector.broadcast %21 : vector<8x16x1xi1> to vector<8x16x32xi1>
    %23 = vector.broadcast %cst_13 : f32 to vector<8x16x32xf32>
    %24 = arith.select %22, %20, %23 : vector<8x16x32xi1>, vector<8x16x32xf32>
    %cst_14 = arith.constant dense<0xFF800000> : vector<8x32xf32>
    %25 = vector.multi_reduction <maximumf>, %24, %cst_14 [1] : vector<8x16x32xf32> to vector<8x32xf32>
    %26 = arith.subf %16, %25 : vector<8x32xf32>
    %27 = math.absf %26 : vector<8x32xf32>
    %28 = arith.mulf %16, %25 : vector<8x32xf32>
    %29 = tpu.concatenate %16, %25, %27, %28 in 1 : vector<8x32xf32>, vector<8x32xf32>, vector<8x32xf32>, vector<8x32xf32> -> vector<8x128xf32>
    %30 = arith.truncf %29 : vector<8x128xf32> to vector<8x128xbf16>
    %c0_15 = arith.constant 0 : index
    %c0_16 = arith.constant 0 : index
    %31 = vector.load %arg3[%c0_15, %c0_16] : memref<512x776xbf16, #tpu.memory_space<vmem>>, vector<128x128xbf16>
    %cst_17 = arith.constant dense<0.000000e+00> : vector<8x128xf32>
    %32 = tpu.matmul %30, %31, %cst_17 {dimension_numbers = #tpu.dot_dimension_numbers<[1], [0], [0], [1], [0, 0, 1, 1], [], []>} : vector<8x128xbf16>, vector<128x128xbf16>, vector<8x128xf32> -> vector<8x128xf32>
    %33 = vector.broadcast %4 : vector<1x128xf32> to vector<8x128xf32>
    %34 = arith.addf %32, %33 : vector<8x128xf32>
    %cst_18 = arith.constant 5.000000e-01 : f32
    %35 = vector.broadcast %cst_18 : f32 to vector<8x128xf32>
    %36 = arith.mulf %35, %34 : vector<8x128xf32>
    %cst_19 = arith.constant 0.797884583 : f32
    %37 = vector.broadcast %cst_19 : f32 to vector<8x128xf32>
    %38 = arith.mulf %34, %37 : vector<8x128xf32>
    %cst_20 = arith.constant 4.471500e-02 : f32
    %39 = vector.broadcast %cst_20 : f32 to vector<8x128xf32>
    %40 = arith.mulf %39, %34 : vector<8x128xf32>
    %41 = arith.mulf %40, %34 : vector<8x128xf32>
    %cst_21 = arith.constant 1.000000e+00 : f32
    %42 = vector.broadcast %cst_21 : f32 to vector<8x128xf32>
    %43 = arith.addf %42, %41 : vector<8x128xf32>
    %44 = arith.mulf %38, %43 : vector<8x128xf32>
    %45 = math.tanh %44 : vector<8x128xf32>
    %cst_22 = arith.constant 1.000000e+00 : f32
    %46 = vector.broadcast %cst_22 : f32 to vector<8x128xf32>
    %47 = arith.addf %46, %45 : vector<8x128xf32>
    %48 = arith.mulf %36, %47 : vector<8x128xf32>
    %49 = arith.truncf %48 : vector<8x128xf32> to vector<8x128xbf16>
    %c0_23 = arith.constant 0 : index
    %c128 = arith.constant 128 : index
    %50 = vector.load %arg3[%c0_23, %c128] : memref<512x776xbf16, #tpu.memory_space<vmem>>, vector<128x32xbf16>
    %cst_24 = arith.constant dense<0.000000e+00> : vector<8x32xf32>
    %51 = tpu.matmul %49, %50, %cst_24 {dimension_numbers = #tpu.dot_dimension_numbers<[1], [0], [0], [1], [0, 0, 1, 1], [], []>} : vector<8x128xbf16>, vector<128x32xbf16>, vector<8x32xf32> -> vector<8x32xf32>
    %52 = vector.broadcast %5 : vector<1x32xf32> to vector<8x32xf32>
    %53 = arith.addf %51, %52 : vector<8x32xf32>
    %54 = arith.truncf %53 : vector<8x32xf32> to vector<8x32xbf16>
    %c0_25 = arith.constant 0 : index
    %c256 = arith.constant 256 : index
    %55 = vector.load %arg3[%c0_25, %c256] : memref<512x776xbf16, #tpu.memory_space<vmem>>, vector<32x512xbf16>
    %cst_26 = arith.constant dense<0.000000e+00> : vector<8x512xf32>
    %56 = tpu.matmul %54, %55, %cst_26 {dimension_numbers = #tpu.dot_dimension_numbers<[1], [0], [0], [1], [0, 0, 1, 1], [], []>} : vector<8x32xbf16>, vector<32x512xbf16>, vector<8x512xf32> -> vector<8x512xf32>
    %57 = vector.broadcast %6 : vector<1x512xf32> to vector<8x512xf32>
    %58 = arith.addf %56, %57 : vector<8x512xf32>
    %cst_27 = arith.constant 5.000000e-01 : f32
    %59 = vector.broadcast %cst_27 : f32 to vector<8x512xf32>
    %60 = arith.mulf %59, %58 : vector<8x512xf32>
    %cst_28 = arith.constant 0.797884583 : f32
    %61 = vector.broadcast %cst_28 : f32 to vector<8x512xf32>
    %62 = arith.mulf %58, %61 : vector<8x512xf32>
    %cst_29 = arith.constant 4.471500e-02 : f32
    %63 = vector.broadcast %cst_29 : f32 to vector<8x512xf32>
    %64 = arith.mulf %63, %58 : vector<8x512xf32>
    %65 = arith.mulf %64, %58 : vector<8x512xf32>
    %cst_30 = arith.constant 1.000000e+00 : f32
    %66 = vector.broadcast %cst_30 : f32 to vector<8x512xf32>
    %67 = arith.addf %66, %65 : vector<8x512xf32>
    %68 = arith.mulf %62, %67 : vector<8x512xf32>
    %69 = math.tanh %68 : vector<8x512xf32>
    %cst_31 = arith.constant 1.000000e+00 : f32
    %70 = vector.broadcast %cst_31 : f32 to vector<8x512xf32>
    %71 = arith.addf %70, %69 : vector<8x512xf32>
    %72 = arith.mulf %60, %71 : vector<8x512xf32>
    %73 = arith.truncf %72 : vector<8x512xf32> to vector<8x512xbf16>
    %c0_32 = arith.constant 0 : index
    %c768 = arith.constant 768 : index
    %74 = vector.load %arg3[%c0_32, %c768] : memref<512x776xbf16, #tpu.memory_space<vmem>>, vector<512x8xbf16>
    %cst_33 = arith.constant dense<0.000000e+00> : vector<8x8xf32>
    %75 = tpu.matmul %73, %74, %cst_33 {dimension_numbers = #tpu.dot_dimension_numbers<[1], [0], [0], [1], [0, 0, 1, 1], [], []>} : vector<8x512xbf16>, vector<512x8xbf16>, vector<8x8xf32> -> vector<8x8xf32>
    %76 = vector.broadcast %7 : vector<1x8xf32> to vector<8x8xf32>
    %77 = arith.addf %75, %76 : vector<8x8xf32>
    %78 = vector.extract_strided_slice %77 {offsets = [0, 0], sizes = [8, 2], strides = [1, 1]} : vector<8x8xf32> to vector<8x2xf32>
    %79 = vector.extract_strided_slice %2 {offsets = [0, 0], sizes = [8, 1], strides = [1, 1]} : vector<8x4xf32> to vector<8x1xf32>
    %cst_34 = arith.constant dense<0xFF800000> : vector<8xf32>
    %80 = vector.multi_reduction <maximumf>, %78, %cst_34 [1] : vector<8x2xf32> to vector<8xf32>
    %81 = vector.shape_cast %80 : vector<8xf32> to vector<8x1xf32>
    %82 = vector.broadcast %81 : vector<8x1xf32> to vector<8x2xf32>
    %83 = arith.subf %78, %82 : vector<8x2xf32>
    %84 = math.exp %83 : vector<8x2xf32>
    %cst_35 = arith.constant dense<0.000000e+00> : vector<8xf32>
    %85 = vector.multi_reduction <add>, %84, %cst_35 [1] : vector<8x2xf32> to vector<8xf32>
    %86 = vector.shape_cast %85 : vector<8xf32> to vector<8x1xf32>
    %87 = math.log %86 : vector<8x1xf32>
    %88 = arith.addf %81, %87 : vector<8x1xf32>
    %89 = tpu.iota {dimensions = array<i32: 1>} : vector<8x2xi32>
    %90 = arith.sitofp %89 : vector<8x2xi32> to vector<8x2xf32>
    %91 = vector.broadcast %79 : vector<8x1xf32> to vector<8x2xf32>
    %92 = arith.cmpf oeq, %90, %91 : vector<8x2xf32>
    %93 = arith.extui %92 : vector<8x2xi1> to vector<8x2xi32>
    %94 = arith.sitofp %93 : vector<8x2xi32> to vector<8x2xf32>
    %95 = vector.broadcast %88 : vector<8x1xf32> to vector<8x2xf32>
    %96 = arith.subf %95, %78 : vector<8x2xf32>
    %97 = arith.mulf %94, %96 : vector<8x2xf32>
    %cst_36 = arith.constant dense<0.000000e+00> : vector<8xf32>
    %98 = vector.multi_reduction <add>, %97, %cst_36 [1] : vector<8x2xf32> to vector<8xf32>
    %99 = vector.shape_cast %98 : vector<8xf32> to vector<8x1xf32>
    %100 = vector.shape_cast %99 : vector<8x1xf32> to vector<1x8x1xf32>
    %cst_37 = arith.constant dense<0.000000e+00> : vector<1xf32>
    %101 = vector.multi_reduction <add>, %100, %cst_37 [1, 2] : vector<1x8x1xf32> to vector<1xf32>
    %102 = vector.shape_cast %101 : vector<1xf32> to vector<1x1x1xf32>
    %103 = vector.extract %102[0, 0, 0] : f32 from vector<1x1x1xf32>
    %cst_38 = arith.constant 1.250000e-01 : f32
    %104 = arith.mulf %103, %cst_38 : f32
    %cst_39 = arith.constant 0.000000e+00 : f32
    %105 = arith.addf %cst_39, %104 : f32
    %106 = vector.extract_strided_slice %77 {offsets = [0, 2], sizes = [8, 2], strides = [1, 1]} : vector<8x8xf32> to vector<8x2xf32>
    %107 = vector.extract_strided_slice %2 {offsets = [0, 1], sizes = [8, 1], strides = [1, 1]} : vector<8x4xf32> to vector<8x1xf32>
    %cst_40 = arith.constant dense<0xFF800000> : vector<8xf32>
    %108 = vector.multi_reduction <maximumf>, %106, %cst_40 [1] : vector<8x2xf32> to vector<8xf32>
    %109 = vector.shape_cast %108 : vector<8xf32> to vector<8x1xf32>
    %110 = vector.broadcast %109 : vector<8x1xf32> to vector<8x2xf32>
    %111 = arith.subf %106, %110 : vector<8x2xf32>
    %112 = math.exp %111 : vector<8x2xf32>
    %cst_41 = arith.constant dense<0.000000e+00> : vector<8xf32>
    %113 = vector.multi_reduction <add>, %112, %cst_41 [1] : vector<8x2xf32> to vector<8xf32>
    %114 = vector.shape_cast %113 : vector<8xf32> to vector<8x1xf32>
    %115 = math.log %114 : vector<8x1xf32>
    %116 = arith.addf %109, %115 : vector<8x1xf32>
    %117 = tpu.iota {dimensions = array<i32: 1>} : vector<8x2xi32>
    %118 = arith.sitofp %117 : vector<8x2xi32> to vector<8x2xf32>
    %119 = vector.broadcast %107 : vector<8x1xf32> to vector<8x2xf32>
    %120 = arith.cmpf oeq, %118, %119 : vector<8x2xf32>
    %121 = arith.extui %120 : vector<8x2xi1> to vector<8x2xi32>
    %122 = arith.sitofp %121 : vector<8x2xi32> to vector<8x2xf32>
    %123 = vector.broadcast %116 : vector<8x1xf32> to vector<8x2xf32>
    %124 = arith.subf %123, %106 : vector<8x2xf32>
    %125 = arith.mulf %122, %124 : vector<8x2xf32>
    %cst_42 = arith.constant dense<0.000000e+00> : vector<8xf32>
    %126 = vector.multi_reduction <add>, %125, %cst_42 [1] : vector<8x2xf32> to vector<8xf32>
    %127 = vector.shape_cast %126 : vector<8xf32> to vector<8x1xf32>
    %128 = vector.shape_cast %127 : vector<8x1xf32> to vector<1x8x1xf32>
    %cst_43 = arith.constant dense<0.000000e+00> : vector<1xf32>
    %129 = vector.multi_reduction <add>, %128, %cst_43 [1, 2] : vector<1x8x1xf32> to vector<1xf32>
    %130 = vector.shape_cast %129 : vector<1xf32> to vector<1x1x1xf32>
    %131 = vector.extract %130[0, 0, 0] : f32 from vector<1x1x1xf32>
    %cst_44 = arith.constant 1.250000e-01 : f32
    %132 = arith.mulf %131, %cst_44 : f32
    %133 = arith.addf %105, %132 : f32
    %134 = vector.extract_strided_slice %77 {offsets = [0, 4], sizes = [8, 2], strides = [1, 1]} : vector<8x8xf32> to vector<8x2xf32>
    %135 = vector.extract_strided_slice %2 {offsets = [0, 2], sizes = [8, 1], strides = [1, 1]} : vector<8x4xf32> to vector<8x1xf32>
    %cst_45 = arith.constant dense<0xFF800000> : vector<8xf32>
    %136 = vector.multi_reduction <maximumf>, %134, %cst_45 [1] : vector<8x2xf32> to vector<8xf32>
    %137 = vector.shape_cast %136 : vector<8xf32> to vector<8x1xf32>
    %138 = vector.broadcast %137 : vector<8x1xf32> to vector<8x2xf32>
    %139 = arith.subf %134, %138 : vector<8x2xf32>
    %140 = math.exp %139 : vector<8x2xf32>
    %cst_46 = arith.constant dense<0.000000e+00> : vector<8xf32>
    %141 = vector.multi_reduction <add>, %140, %cst_46 [1] : vector<8x2xf32> to vector<8xf32>
    %142 = vector.shape_cast %141 : vector<8xf32> to vector<8x1xf32>
    %143 = math.log %142 : vector<8x1xf32>
    %144 = arith.addf %137, %143 : vector<8x1xf32>
    %145 = tpu.iota {dimensions = array<i32: 1>} : vector<8x2xi32>
    %146 = arith.sitofp %145 : vector<8x2xi32> to vector<8x2xf32>
    %147 = vector.broadcast %135 : vector<8x1xf32> to vector<8x2xf32>
    %148 = arith.cmpf oeq, %146, %147 : vector<8x2xf32>
    %149 = arith.extui %148 : vector<8x2xi1> to vector<8x2xi32>
    %150 = arith.sitofp %149 : vector<8x2xi32> to vector<8x2xf32>
    %151 = vector.broadcast %144 : vector<8x1xf32> to vector<8x2xf32>
    %152 = arith.subf %151, %134 : vector<8x2xf32>
    %153 = arith.mulf %150, %152 : vector<8x2xf32>
    %cst_47 = arith.constant dense<0.000000e+00> : vector<8xf32>
    %154 = vector.multi_reduction <add>, %153, %cst_47 [1] : vector<8x2xf32> to vector<8xf32>
    %155 = vector.shape_cast %154 : vector<8xf32> to vector<8x1xf32>
    %156 = vector.shape_cast %155 : vector<8x1xf32> to vector<1x8x1xf32>
    %cst_48 = arith.constant dense<0.000000e+00> : vector<1xf32>
    %157 = vector.multi_reduction <add>, %156, %cst_48 [1, 2] : vector<1x8x1xf32> to vector<1xf32>
    %158 = vector.shape_cast %157 : vector<1xf32> to vector<1x1x1xf32>
    %159 = vector.extract %158[0, 0, 0] : f32 from vector<1x1x1xf32>
    %cst_49 = arith.constant 1.250000e-01 : f32
    %160 = arith.mulf %159, %cst_49 : f32
    %161 = arith.addf %133, %160 : f32
    %162 = vector.extract_strided_slice %77 {offsets = [0, 6], sizes = [8, 2], strides = [1, 1]} : vector<8x8xf32> to vector<8x2xf32>
    %163 = vector.extract_strided_slice %2 {offsets = [0, 3], sizes = [8, 1], strides = [1, 1]} : vector<8x4xf32> to vector<8x1xf32>
    %cst_50 = arith.constant dense<0xFF800000> : vector<8xf32>
    %164 = vector.multi_reduction <maximumf>, %162, %cst_50 [1] : vector<8x2xf32> to vector<8xf32>
    %165 = vector.shape_cast %164 : vector<8xf32> to vector<8x1xf32>
    %166 = vector.broadcast %165 : vector<8x1xf32> to vector<8x2xf32>
    %167 = arith.subf %162, %166 : vector<8x2xf32>
    %168 = math.exp %167 : vector<8x2xf32>
    %cst_51 = arith.constant dense<0.000000e+00> : vector<8xf32>
    %169 = vector.multi_reduction <add>, %168, %cst_51 [1] : vector<8x2xf32> to vector<8xf32>
    %170 = vector.shape_cast %169 : vector<8xf32> to vector<8x1xf32>
    %171 = math.log %170 : vector<8x1xf32>
    %172 = arith.addf %165, %171 : vector<8x1xf32>
    %173 = tpu.iota {dimensions = array<i32: 1>} : vector<8x2xi32>
    %174 = arith.sitofp %173 : vector<8x2xi32> to vector<8x2xf32>
    %175 = vector.broadcast %163 : vector<8x1xf32> to vector<8x2xf32>
    %176 = arith.cmpf oeq, %174, %175 : vector<8x2xf32>
    %177 = arith.extui %176 : vector<8x2xi1> to vector<8x2xi32>
    %178 = arith.sitofp %177 : vector<8x2xi32> to vector<8x2xf32>
    %179 = vector.broadcast %172 : vector<8x1xf32> to vector<8x2xf32>
    %180 = arith.subf %179, %162 : vector<8x2xf32>
    %181 = arith.mulf %178, %180 : vector<8x2xf32>
    %cst_52 = arith.constant dense<0.000000e+00> : vector<8xf32>
    %182 = vector.multi_reduction <add>, %181, %cst_52 [1] : vector<8x2xf32> to vector<8xf32>
    %183 = vector.shape_cast %182 : vector<8xf32> to vector<8x1xf32>
    %184 = vector.shape_cast %183 : vector<8x1xf32> to vector<1x8x1xf32>
    %cst_53 = arith.constant dense<0.000000e+00> : vector<1xf32>
    %185 = vector.multi_reduction <add>, %184, %cst_53 [1, 2] : vector<1x8x1xf32> to vector<1xf32>
    %186 = vector.shape_cast %185 : vector<1xf32> to vector<1x1x1xf32>
    %187 = vector.extract %186[0, 0, 0] : f32 from vector<1x1x1xf32>
    %cst_54 = arith.constant 1.250000e-01 : f32
    %188 = arith.mulf %187, %cst_54 : f32
    %189 = arith.addf %161, %188 : f32
    %cst_55 = arith.constant 0.000000e+00 : f32
    %190 = vector.broadcast %cst_55 : f32 to vector<8x8xf32>
    %191 = vector.broadcast %189 : f32 to vector<8x8xf32>
    %192 = arith.addf %190, %191 : vector<8x8xf32>
    %193 = tpu.concatenate %77, %53, %192 in 1 : vector<8x8xf32>, vector<8x32xf32>, vector<8x8xf32> -> vector<8x48xf32>
    %c0_56 = arith.constant 0 : index
    %c0_57 = arith.constant 0 : index
    %194 = vector.load %arg4[%c0_56, %c0_57] : memref<8x48xf32, #tpu.memory_space<vmem>>, vector<8x48xf32>
    tpu.vector_store %arg4[%c0_56, %c0_57], %193 {strides = array<i32>} : memref<8x48xf32, #tpu.memory_space<vmem>>, vector<8x48xf32>,
    return
  }
  func.func @transform_0(%arg0: i32) -> (i32, i32, i32) {
    %c0_i32 = arith.constant 0 : i32
    %c0_i32_0 = arith.constant 0 : i32
    %c0_i32_1 = arith.constant 0 : i32
    %c0_i32_2 = arith.constant 0 : i32
    return %c0_i32, %c0_i32_0, %c0_i32_1 : i32, i32, i32
  }
  func.func @transform_1(%arg0: i32) -> (i32, i32) {
    %c0_i32 = arith.constant 0 : i32
    %c0_i32_0 = arith.constant 0 : i32
    %c0_i32_1 = arith.constant 0 : i32
    return %c0_i32, %c0_i32_0 : i32, i32
  }
  func.func @transform_2(%arg0: i32) -> (i32, i32) {
    %c0_i32 = arith.constant 0 : i32
    %c0_i32_0 = arith.constant 0 : i32
    %c0_i32_1 = arith.constant 0 : i32
    return %c0_i32, %c0_i32_0 : i32, i32
  }
  func.func @transform_3(%arg0: i32) -> (i32, i32) {
    %c0_i32 = arith.constant 0 : i32
    %c0_i32_0 = arith.constant 0 : i32
    %c0_i32_1 = arith.constant 0 : i32
    return %c0_i32, %c0_i32_0 : i32, i32
  }
}

</mosaic_0001>

<bundles_post_ra>
// kernel: forward.1
= control target key start
LH: loop header
LB: loop body
LE: loop exit
PB: predicated region body
PF: predicated region fallthrough
CT: control target
= control target key end

     0   :  { %v20_v0 = vlaneseq  ;;  %v1811_v19 = vmov 0.0   ;;  %vm188_vm2 = vcmask 261120   ;;  %vm509_vm11 = vcmask 1041409   ;;  %s1813_s14 = smov 32   ;;  %s1814_s15 = smov 96   ;;  %s2347_s1 = inlined_call_operand.vmem [shape: f32[16,512], index: 1, kind: input, shape index: {}]   ;;  %s2348_s2 = inlined_call_operand.vmem [shape: bf16[512,776], index: 2, kind: input, shape index: {}]   ;;  %s2349_s0 = inlined_call_operand.vmem [shape: f32[8,32,32], index: 0, kind: input, shape index: {}]   ;;  %s2350_s3 = inlined_call_operand.vmem [shape: f32[8,48], index: 3, kind: output, shape index: {}]  }
   0x1   :  { %v15_v2 = vld [vmem:[%s2347_s1] sm:$0xff]  ;;  %1657 = vmatprep.subr.bf16.mxu0 %v1811_v19  ;;  %1677 = vmatprep.subr.bf16.mxu1 %v1811_v19  ;;  %v1725_v21 = vld [vmem:[%s2348_s2 + $0x38] ss:$28 sps:$4 sm:$0xff]   ;;  %v1726_v22 = vld [vmem:[%s2348_s2 + $0x70] ss:$28 sps:$4 sm:$0xff]   ;;  %s1815_s16 = smov 64  }
   0x2   :  { %v1846_v1 = vshrl.u32 %v20_v0, 7  ;;  %v1724_v20 = vld [vmem:[%s2348_s2] ss:$28 sps:$4 sm:$0xff]   ;;  %v1727_v23 = vld [vmem:[%s2348_s2 + $0xa8] ss:$28 sps:$4 sm:$0xff]   ;;  %v341_v43 = vld [vmem:[%s2349_s0 + $0x10] sm:$0xff] }
   0x3   :  { %1658 = vmatpush3.bf16.msra.mxu0 %v1724_v20  ;;  %v1728_v24 = vld [vmem:[%s2348_s2 + $0xe0] ss:$28 sps:$4 sm:$0xff]   ;;  %v1729_v25 = vld [vmem:[%s2348_s2 + $0x118] ss:$28 sps:$4 sm:$0xff]   ;;  %v127_v30 = vld [vmem:[%s2349_s0 + $0x28] sm:$0xff]  ;;  %s1818_s8 = smov 126  }
   0x4   :  { %v33_v3 = vsub.s32 1, %v1846_v1  ;;  %v22_v4 = vsub.s32 0, %v1846_v1  ;;  %v1858_v7 = vsub.s32 2, %v1846_v1  ;;  %v55_v9 = vsub.s32 3, %v1846_v1  ;;  %1659 = vmatprep.subr.bf16.mxu0 %v1811_v19  ;;  %v126_v28 = vld [vmem:[%s2349_s0 + $0x20] sm:$0xff]  ;;  %v125_v31 = vld [vmem:[%s2349_s0 + $0x8] sm:$0xff] }
   0x5   :  { %v66_v11 = vsub.s32 4, %v1846_v1  ;;  %v77_v13 = vsub.s32 5, %v1846_v1  ;;  %v88_v15 = vsub.s32 6, %v1846_v1  ;;  %v99_v17 = vsub.s32 7, %v1846_v1  ;;  %v124_v29 = vld [vmem:[%s2349_s0] sm:$0xff]  ;;  %v342_v42 = vld [vmem:[%s2349_s0 + $0x18] sm:$0xff] }
   0x6   :  { %v34_v5 = vrot.slane %v15_v2, %v33_v3  ;;  %v23_v6 = vrot.slane %v15_v2, %v22_v4  ;;  %v45_v8 = vrot.slane %v15_v2, %v1858_v7  ;;  %v56_v10 = vrot.slane %v15_v2, %v55_v9  ;;  %v344_v54 = vld [vmem:[%s2349_s0 + $0x38] sm:$0xff]  ;;  %v343_v59 = vld [vmem:[%s2349_s0 + $0x30] sm:$0xff] }
   0x7   :  { %v67_v12 = vrot.slane %v15_v2, %v66_v11  ;;  %v78_v14 = vrot.slane %v15_v2, %v77_v13  ;;  %v89_v16 = vrot.slane %v15_v2, %v88_v15  ;;  %v100_v18 = vrot.slane %v15_v2, %v99_v17  ;;  %1660 = vmatpush3.bf16.msra.mxu0 %v1725_v21 }
   0x8   :  { %36 = vbcast.lane.b32.xlu1 %v34_v5, 256  ;;  %25 = vbcast.lane.b32.xlu0 %v23_v6, 256 }
   0x9   :  { %1661 = vmatprep.subr.bf16.mxu0 %v1811_v19 }
   0xb   :  { %1662 = vmatpush3.bf16.msra.mxu0 %v1726_v22 }
   0xc   :  { %40 = vbcast.lane.b32.xlu1 %v34_v5, 264  ;;  %29 = vbcast.lane.b32.xlu0 %v23_v6, 264 }
   0xd   :  { %1663 = vmatprep.subr.bf16.mxu0 %v1811_v19 }
   0xf   :  { %1664 = vmatpush3.bf16.msra.mxu0 %v1727_v23 }
  0x10   :  { %267 = vbcast.lane.b32.xlu1 %v23_v6, 280  ;;  %263 = vbcast.lane.b32.xlu0 %v23_v6, 272 }
  0x11   :  { %1665 = vmatprep.subr.bf16.mxu0 %v1811_v19 }
  0x13   :  { %1666 = vmatpush3.bf16.msra.mxu0 %v1728_v24 }
  0x14   :  { %275 = vbcast.lane.b32.xlu1 %v34_v5, 280  ;;  %271 = vbcast.lane.b32.xlu0 %v34_v5, 272  ;;  %v129_v5 = vld [vmem:[%s2349_s0 + $0x48] sm:$0xff] }
  0x15   :  { %1667 = vmatprep.subr.bf16.mxu0 %v1811_v19 }
  0x17   :  { %1668 = vmatpush3.bf16.msra.mxu0 %v1729_v25 }
  0x18   :  { %51 = vbcast.lane.b32.xlu1 %v45_v8, 264  ;;  %47 = vbcast.lane.b32.xlu0 %v45_v8, 256 }
  0x19   :  { %1669 = vmatprep.subr.bf16.mxu0 %v1811_v19 }
  0x1c   :  { %283 = vbcast.lane.b32.xlu1 %v45_v8, 280  ;;  %279 = vbcast.lane.b32.xlu0 %v45_v8, 272 }
  0x20   :  { %62 = vbcast.lane.b32.xlu1 %v56_v10, 264  ;;  %58 = vbcast.lane.b32.xlu0 %v56_v10, 256 }
  0x24   :  { %291 = vbcast.lane.b32.xlu1 %v56_v10, 280  ;;  %287 = vbcast.lane.b32.xlu0 %v56_v10, 272 }
  0x28   :  { %73 = vbcast.lane.b32.xlu1 %v67_v12, 264  ;;  %69 = vbcast.lane.b32.xlu0 %v67_v12, 256 }
  0x2c   :  { %299 = vbcast.lane.b32.xlu1 %v67_v12, 280  ;;  %295 = vbcast.lane.b32.xlu0 %v67_v12, 272  ;;  %v128_v12 = vld [vmem:[%s2349_s0 + $0x40] sm:$0xff] }
  0x30   :  { %84 = vbcast.lane.b32.xlu1 %v78_v14, 264  ;;  %80 = vbcast.lane.b32.xlu0 %v78_v14, 256 }
  0x34   :  { %307 = vbcast.lane.b32.xlu1 %v78_v14, 280  ;;  %303 = vbcast.lane.b32.xlu0 %v78_v14, 272 }
  0x38   :  { %95 = vbcast.lane.b32.xlu1 %v89_v16, 264  ;;  %91 = vbcast.lane.b32.xlu0 %v89_v16, 256 }
  0x3c   :  { %315 = vbcast.lane.b32.xlu1 %v89_v16, 280  ;;  %311 = vbcast.lane.b32.xlu0 %v89_v16, 272 }
  0x40   :  { %106 = vbcast.lane.b32.xlu1 %v100_v18, 264  ;;  %102 = vbcast.lane.b32.xlu0 %v100_v18, 256 }
  0x44   :  { %323 = vbcast.lane.b32.xlu1 %v100_v18, 280  ;;  %319 = vbcast.lane.b32.xlu0 %v100_v18, 272 }
  0x7a   :  { %v37_v26 = vpop.permute.xlu1 %36  ;;  %v26_v27 = vpop.permute.xlu0 %25 }
  0x7b   :  { %vm110_vm0 = vcmp.gt.f32.partialorder %v37_v26, 0.0  ;;  %vm108_vm1 = vcmp.gt.f32.partialorder %v26_v27, 0.0 }
  0x7c   :  { %v174_v32 = vsel %vm110_vm0, %v126_v28, -1e+09  ;;  %v172_v33 = vsel %vm108_vm1, %v124_v29, -1e+09  ;;  %v346_v29 = vld [vmem:[%s2349_s0 + $0x58] sm:$0xff] }
  0x7d   :  { %v198_v38 = vsel %vm188_vm2, %v174_v32, -inf  ;;  %v189_v39 = vsel %vm188_vm2, %v172_v33, -inf }
  0x7e   :  { %v41_v34 = vpop.permute.xlu1 %40  ;;  %v30_v35 = vpop.permute.xlu0 %29 }
  0x7f   :  { %vm111_vm3 = vcmp.gt.f32.partialorder %v41_v34, 0.0  ;;  %vm109_vm4 = vcmp.gt.f32.partialorder %v30_v35, 0.0  ;;  %v131_v34 = vld [vmem:[%s2349_s0 + $0x68] sm:$0xff] }
  0x80   :  { %v175_v36 = vsel %vm111_vm3, %v127_v30, -1e+09  ;;  %v173_v37 = vsel %vm109_vm4, %v125_v31, -1e+09  ;;  %v345_v30 = vld [vmem:[%s2349_s0 + $0x50] sm:$0xff]  ;;  %vm511_vm3 = vcmask 1042434  }
  0x81   :  { %v199_v40 = vsel %vm188_vm2, %v175_v36, -inf  ;;  %v190_v41 = vsel %vm188_vm2, %v173_v37, -inf }
  0x82   :  { %v200_v44 = vmax.f32 %v198_v38, %v199_v40  ;;  %v191_v45 = vmax.f32 %v189_v39, %v190_v41  ;;  %v268_v46 = vpop.permute.xlu1 %267  ;;  %v264_v47 = vpop.permute.xlu0 %263  ;;  %v130_v40 = vld [vmem:[%s2349_s0 + $0x60] sm:$0xff] }
  0x83   :  { %vm326_vm5 = vcmp.gt.f32.partialorder %v268_v46, 0.0  ;;  %vm325_vm6 = vcmp.gt.f32.partialorder %v264_v47, 0.0 }
  0x84   :  { %v201_v48 = vrot.slane %v200_v44, 4  ;;  %v192_v49 = vrot.slane %v191_v45, 4  ;;  %v390_v50 = vsel %vm326_vm5, %v342_v42, -1e+09  ;;  %v389_v51 = vsel %vm325_vm6, %v341_v43, -1e+09 }
  0x85   :  { %v406_v52 = vsel %vm188_vm2, %v390_v50, -inf  ;;  %v405_v53 = vsel %vm188_vm2, %v389_v51, -inf }
  0x86   :  { %v202_v55 = vmax.f32 %v200_v44, %v201_v48  ;;  %v193_v56 = vmax.f32 %v191_v45, %v192_v49  ;;  %v276_v57 = vpop.permute.xlu1 %275  ;;  %v272_v58 = vpop.permute.xlu0 %271  ;;  %v407_v62 = vmax.f32 %v405_v53, %v406_v52 }
  0x87   :  { %vm328_vm7 = vcmp.gt.f32.partialorder %v276_v57, 0.0  ;;  %vm327_vm8 = vcmp.gt.f32.partialorder %v272_v58, 0.0 }
  0x88   :  { %v203_v60 = vrot.slane %v202_v55, 2  ;;  %v194_v61 = vrot.slane %v193_v56, 2  ;;  %v392_v63 = vsel %vm328_vm7, %v344_v54, -1e+09  ;;  %v391_v2 = vsel %vm327_vm8, %v343_v59, -1e+09 }
  0x89   :  { %v415_v13 = vsel %vm188_vm2, %v392_v63, -inf  ;;  %v414_v14 = vsel %vm188_vm2, %v391_v2, -inf  ;;  %v408_v17 = vrot.slane %v407_v62, 4  ;;  %v348_v54 = vld [vmem:[%s2349_s0 + $0x78] sm:$0xff]  ;;  %v133_v59 = vld [vmem:[%s2349_s0 + $0x88] sm:$0xff] }
  0x8a   :  { %v204_v6 = vmax.f32 %v202_v55, %v203_v60  ;;  %v195_v8 = vmax.f32 %v193_v56, %v194_v61  ;;  %v52_v10 = vpop.permute.xlu1 %51  ;;  %v48_v11 = vpop.permute.xlu0 %47  ;;  %v416_v24 = vmax.f32 %v414_v14, %v415_v13  ;;  %v347_v55 = vld [vmem:[%s2349_s0 + $0x70] sm:$0xff] }
  0x8b   :  { %vm113_vm9 = vcmp.gt.f32.partialorder %v52_v10, 0.0  ;;  %vm112_vm10 = vcmp.gt.f32.partialorder %v48_v11, 0.0  ;;  %v409_v32 = vmax.f32 %v407_v62, %v408_v17 }
  0x8c   :  { %v205_v15 = vrot.slane %v204_v6, 1  ;;  %v196_v16 = vrot.slane %v195_v8, 1  ;;  %v177_v18 = vsel %vm113_vm9, %v129_v5, -1e+09  ;;  %v176_v21 = vsel %vm112_vm10, %v128_v12, -1e+09 }
  0x8d   :  { %v208_v20 = vsel %vm188_vm2, %v177_v18, -inf  ;;  %v207_v25 = vsel %vm188_vm2, %v176_v21, -inf  ;;  %v417_v35 = vrot.slane %v416_v24, 4  ;;  %v410_v42 = vrot.slane %v409_v32, 2 }
  0x8e   :  { %v1933_v22 = vmax.f32 %v204_v6, %v205_v15  ;;  %v1935_v23 = vmax.f32 %v195_v8, %v196_v16  ;;  %v284_v26 = vpop.permute.xlu1 %283  ;;  %v280_v27 = vpop.permute.xlu0 %279  ;;  %v209_v28 = vmax.f32 %v207_v25, %v208_v20  ;;  %v132_v8 = vld [vmem:[%s2349_s0 + $0x80] sm:$0xff] }
  0x8f   :  { %vm330_vm12 = vcmp.gt.f32.partialorder %v284_v26, 0.0  ;;  %vm329_vm13 = vcmp.gt.f32.partialorder %v280_v27, 0.0  ;;  %v418_v48 = vmax.f32 %v416_v24, %v417_v35  ;;  %v411_v56 = vmax.f32 %v409_v32, %v410_v42  ;;  %v350_v24 = vld [vmem:[%s2349_s0 + $0x98] sm:$0xff]  ;;  %v349_v26 = vld [vmem:[%s2349_s0 + $0x90] sm:$0xff] }
  0x90   :  { %v510_v31 = vsel %vm509_vm11, %v1933_v22, %v1935_v23  ;;  %v210_v33 = vrot.slane %v209_v28, 4  ;;  %v394_v36 = vsel %vm330_vm12, %v346_v29, -1e+09  ;;  %v393_v37 = vsel %vm329_vm13, %v345_v30, -1e+09 }
  0x91   :  { %v424_v45 = vsel %vm188_vm2, %v394_v36, -inf  ;;  %v423_v46 = vsel %vm188_vm2, %v393_v37, -inf  ;;  %v419_v60 = vrot.slane %v418_v48, 2  ;;  %v412_v10 = vrot.slane %v411_v56, 1 }
  0x92   :  { %v63_v38 = vpop.permute.xlu1 %62  ;;  %v59_v39 = vpop.permute.xlu0 %58  ;;  %v211_v41 = vmax.f32 %v209_v28, %v210_v33  ;;  %v425_v57 = vmax.f32 %v423_v46, %v424_v45  ;;  %v135_v33 = vld [vmem:[%s2349_s0 + $0xa8] sm:$0xff] }
  0x93   :  { %vm115_vm14 = vcmp.gt.f32.partialorder %v63_v38, 0.0  ;;  %vm114_vm15 = vcmp.gt.f32.partialorder %v59_v39, 0.0  ;;  %v420_v16 = vmax.f32 %v418_v48, %v419_v60 }
  0x94   :  { %v179_v43 = vsel %vm115_vm14, %v131_v34, -1e+09  ;;  %v212_v44 = vrot.slane %v211_v41, 2  ;;  %v178_v47 = vsel %vm114_vm15, %v130_v40, -1e+09  ;;  %v426_v11 = vrot.slane %v425_v57, 4 }
  0x95   :  { %v217_v52 = vsel %vm188_vm2, %v179_v43, -inf  ;;  %v216_v53 = vsel %vm188_vm2, %v178_v47, -inf  ;;  %v1988_v34 = vmax.f32 %v411_v56, %v412_v10  ;;  %v421_v35 = vrot.slane %v420_v16, 1  ;;  %v134_v40 = vld [vmem:[%s2349_s0 + $0xa0] sm:$0xff]  ;;  %v137_v10 = vld [vmem:[%s2349_s0 + $0xc8] sm:$0xff] }
  0x96   :  { %v292_v49 = vpop.permute.xlu1 %291  ;;  %v288_v50 = vpop.permute.xlu0 %287  ;;  %v213_v51 = vmax.f32 %v211_v41, %v212_v44  ;;  %v218_v61 = vmax.f32 %v216_v53, %v217_v52  ;;  %v427_v28 = vmax.f32 %v425_v57, %v426_v11 }
  0x97   :  { %vm332_vm0 = vcmp.gt.f32.partialorder %v292_v49, 0.0  ;;  %vm331_vm1 = vcmp.gt.f32.partialorder %v288_v50, 0.0  ;;  %v352_v49 = vld [vmem:[%s2349_s0 + $0xb8] sm:$0xff]  ;;  %v351_v50 = vld [vmem:[%s2349_s0 + $0xb0] sm:$0xff]  ;;  %v2005_v57 = vmax.f32 %v420_v16, %v421_v35  ;;  %v2014_v11 = vmul.f32 %v1988_v34, %v1935_v23 }
  0x98   :  { %v214_v58 = vrot.slane %v213_v51, 1  ;;  %v396_v62 = vsel %vm332_vm0, %v348_v54, -1e+09  ;;  %v395_v63 = vsel %vm331_vm1, %v347_v55, -1e+09  ;;  %v219_v17 = vrot.slane %v218_v61, 4 }
  0x99   :  { %v433_v14 = vsel %vm188_vm2, %v396_v62, -inf  ;;  %v432_v15 = vsel %vm188_vm2, %v395_v63, -inf  ;;  %v428_v43 = vrot.slane %v427_v28, 2  ;;  %vm513_vm1 = vcmask 1043459  }
  0x9a   :  { %v74_v2 = vpop.permute.xlu1 %73  ;;  %v70_v5 = vpop.permute.xlu0 %69  ;;  %v1966_v6 = vmax.f32 %v213_v51, %v214_v58  ;;  %v434_v29 = vmax.f32 %v432_v15, %v433_v14  ;;  %v220_v36 = vmax.f32 %v218_v61, %v219_v17  ;;  %v477_v51 = vsub.f32 %v1935_v23, %v1988_v34 }
  0x9b   :  { %vm117_vm4 = vcmp.gt.f32.partialorder %v74_v2, 0.0  ;;  %vm116_vm5 = vcmp.gt.f32.partialorder %v70_v5, 0.0  ;;  %v478_v23 = vsub.f32 %v1933_v22, %v2005_v57 }
  0x9c   :  { %v181_v12 = vsel %vm117_vm4, %v133_v59, -1e+09  ;;  %v1973_v13 = vsel %vm511_vm3, %v1966_v6, %v510_v31  ;;  %v180_v20 = vsel %vm116_vm5, %v132_v8, -1e+09  ;;  %v435_v44 = vrot.slane %v434_v29, 4 }
  0x9d   :  { %v226_v18 = vsel %vm188_vm2, %v181_v12, -inf  ;;  %v225_v27 = vsel %vm188_vm2, %v180_v20, -inf  ;;  %v221_v52 = vrot.slane %v220_v36, 2  ;;  %v429_v59 = vmax.f32 %v427_v28, %v428_v43 }
  0x9e   :  { %v300_v21 = vpop.permute.xlu1 %299  ;;  %v296_v25 = vpop.permute.xlu0 %295  ;;  %v227_v30 = vmax.f32 %v225_v27, %v226_v18  ;;  %v436_v60 = vmax.f32 %v434_v29, %v435_v44  ;;  %v136_v18 = vld [vmem:[%s2349_s0 + $0xc0] sm:$0xff]  ;;  %v2019_v20 = vand.u32 2147483647, %v477_v51 }
  0x9f   :  { %vm334_vm6 = vcmp.gt.f32.partialorder %v300_v21, 0.0  ;;  %vm333_vm7 = vcmp.gt.f32.partialorder %v296_v25, 0.0  ;;  %v222_v12 = vmax.f32 %v220_v36, %v221_v52  ;;  %v138_v51 = vld [vmem:[%s2349_s0 + $0xe0] sm:$0xff] }
  0xa0   :  { %v398_v31 = vsel %vm334_vm6, %v350_v24, -1e+09  ;;  %v397_v32 = vsel %vm333_vm7, %v349_v26, -1e+09  ;;  %v228_v41 = vrot.slane %v227_v30, 4  ;;  %v430_v24 = vrot.slane %v429_v59, 1 }
  0xa1   :  { %v442_v37 = vsel %vm188_vm2, %v398_v31, -inf  ;;  %v441_v42 = vsel %vm188_vm2, %v397_v32, -inf  ;;  %v437_v25 = vrot.slane %v436_v60, 2  ;;  %v354_v31 = vld [vmem:[%s2349_s0 + $0xd8] sm:$0xff]  ;;  %v353_v32 = vld [vmem:[%s2349_s0 + $0xd0] sm:$0xff]  ;;  %vm515_vm6 = vcmask 1044484  }
  0xa2   :  { %v85_v38 = vpop.permute.xlu1 %84  ;;  %v81_v39 = vpop.permute.xlu0 %80  ;;  %v443_v46 = vmax.f32 %v441_v42, %v442_v37  ;;  %v229_v53 = vmax.f32 %v227_v30, %v228_v41  ;;  %v2031_v42 = vmax.f32 %v429_v59, %v430_v24  ;;  %vm517_vm7 = vcmask 1045509  }
  0xa3   :  { %vm119_vm8 = vcmp.gt.f32.partialorder %v85_v38, 0.0  ;;  %vm118_vm9 = vcmp.gt.f32.partialorder %v81_v39, 0.0  ;;  %v438_v43 = vmax.f32 %v436_v60, %v437_v25 }
  0xa4   :  { %v183_v45 = vsel %vm119_vm8, %v135_v33, -1e+09  ;;  %v182_v48 = vsel %vm118_vm9, %v134_v40, -1e+09  ;;  %v444_v63 = vrot.slane %v443_v46, 4  ;;  %v230_v14 = vrot.slane %v229_v53, 2 }
  0xa5   :  { %v235_v47 = vsel %vm188_vm2, %v183_v45, -inf  ;;  %v234_v54 = vsel %vm188_vm2, %v182_v48, -inf  ;;  %v223_v33 = vrot.slane %v222_v12, 1  ;;  %vm519_vm8 = vcmask 1046534  }
  0xa6   :  { %v308_v55 = vpop.permute.xlu1 %307  ;;  %v304_v56 = vpop.permute.xlu0 %303  ;;  %v236_v58 = vmax.f32 %v234_v54, %v235_v47  ;;  %v445_v28 = vmax.f32 %v443_v46, %v444_v63  ;;  %v231_v35 = vmax.f32 %v229_v53, %v230_v14  ;;  %v356_v14 = vld [vmem:[%s2349_s0 + $0xf8] sm:$0xff] }
  0xa7   :  { %vm336_vm10 = vcmp.gt.f32.partialorder %v308_v55, 0.0  ;;  %vm335_vm12 = vcmp.gt.f32.partialorder %v304_v56, 0.0  ;;  %v2041_v52 = vmax.f32 %v222_v12, %v223_v33 }
  0xa8   :  { %v400_v61 = vsel %vm336_vm10, %v352_v49, -1e+09  ;;  %v399_v62 = vsel %vm335_vm12, %v351_v50, -1e+09  ;;  %v237_v2 = vrot.slane %v236_v58, 4  ;;  %v446_v46 = vrot.slane %v445_v28, 2 }
  0xa9   :  { %v451_v5 = vsel %vm188_vm2, %v400_v61, -inf  ;;  %v450_v8 = vsel %vm188_vm2, %v399_v62, -inf  ;;  %v139_v50 = vld [vmem:[%s2349_s0 + $0xe8] sm:$0xff]  ;;  %v232_v53 = vrot.slane %v231_v35, 1  ;;  %v439_v61 = vrot.slane %v438_v43, 1 }
  0xaa   :  { %v452_v15 = vmax.f32 %v450_v8, %v451_v5  ;;  %v96_v16 = vpop.permute.xlu1 %95  ;;  %v92_v17 = vpop.permute.xlu0 %91  ;;  %v238_v21 = vmax.f32 %v236_v58, %v237_v2  ;;  %v447_v5 = vmax.f32 %v445_v28, %v446_v46  ;;  %vm521_vm12 = vcmask 1047559  }
  0xab   :  { %vm121_vm13 = vcmp.gt.f32.partialorder %v96_v16, 0.0  ;;  %vm120_vm14 = vcmp.gt.f32.partialorder %v92_v17, 0.0  ;;  %v2051_v16 = vmax.f32 %v231_v35, %v232_v53  ;;  %v479_v53 = vsub.f32 %v1966_v6, %v2031_v42 }
  0xac   :  { %v453_v26 = vrot.slane %v452_v15, 4  ;;  %v185_v27 = vsel %vm121_vm13, %v137_v10, -1e+09  ;;  %v184_v30 = vsel %vm120_vm14, %v136_v18, -1e+09  ;;  %v239_v40 = vrot.slane %v238_v21, 2 }
  0xad   :  { %v244_v29 = vsel %vm188_vm2, %v185_v27, -inf  ;;  %v243_v37 = vsel %vm188_vm2, %v184_v30, -inf  ;;  %vm1812_vm13 = vmmov 0   ;;  %vm1382_vm14 = vcmask 31760  }
  0xae   :  { %v454_v36 = vmax.f32 %v452_v15, %v453_v26  ;;  %v316_v38 = vpop.permute.xlu1 %315  ;;  %v312_v39 = vpop.permute.xlu0 %311  ;;  %v245_v41 = vmax.f32 %v243_v37, %v244_v29  ;;  %v240_v59 = vmax.f32 %v238_v21, %v239_v40  ;;  %v355_v15 = vld [vmem:[%s2349_s0 + $0xf0] sm:$0xff]  ;;  %1673 = vmatprep.mubr.msk.bf16.mxu0 %vm1812_vm13, %v1811_v19  ;;  %1693 = vmatprep.mubr.msk.bf16.mxu1 %vm1812_vm13, %v1811_v19  ;;  %s1819_s0 = smov 122  }
  0xaf   :  { %vm338_vm15 = vcmp.gt.f32.partialorder %v316_v38, 0.0  ;;  %vm337_vm0 = vcmp.gt.f32.partialorder %v312_v39, 0.0 }
  0xb0   :  { %v402_v44 = vsel %vm338_vm15, %v354_v31, -1e+09  ;;  %v401_v45 = vsel %vm337_vm0, %v353_v32, -1e+09  ;;  %v246_v47 = vrot.slane %v245_v41, 4  ;;  %v455_v54 = vrot.slane %v454_v36, 2 }
  0xb1   :  { %v460_v48 = vsel %vm188_vm2, %v402_v44, -inf  ;;  %v459_v49 = vsel %vm188_vm2, %v401_v45, -inf  ;;  %v241_v26 = vrot.slane %v240_v59, 1  ;;  %v448_v32 = vrot.slane %v447_v5, 1 }
  0xb2   :  { %v461_v55 = vmax.f32 %v459_v49, %v460_v48  ;;  %v107_v56 = vpop.permute.xlu1 %106  ;;  %v103_v58 = vpop.permute.xlu0 %102  ;;  %v247_v60 = vmax.f32 %v245_v41, %v246_v47  ;;  %v456_v17 = vmax.f32 %v454_v36, %v455_v54  ;;  %v486_v41 = vand.u32 2147483647, %v478_v23 }
  0xb3   :  { %vm123_vm4 = vcmp.gt.f32.partialorder %v107_v56, 0.0  ;;  %vm122_vm5 = vcmp.gt.f32.partialorder %v103_v58, 0.0  ;;  %v494_v44 = vmul.f32 %v2005_v57, %v1933_v22  ;;  %v532_v45 = vsel %vm509_vm11, %v2005_v57, %v1988_v34 }
  0xb4   :  { %v462_v62 = vrot.slane %v461_v55, 4  ;;  %v187_v63 = vsel %vm123_vm4, %v139_v50, -1e+09  ;;  %v186_v2 = vsel %vm122_vm5, %v138_v51, -1e+09  ;;  %v248_v8 = vrot.slane %v247_v60, 2 }
  0xb5   :  { %v253_v10 = vsel %vm188_vm2, %v187_v63, -inf  ;;  %v252_v12 = vsel %vm188_vm2, %v186_v2, -inf  ;;  %v457_v36 = vrot.slane %v456_v17, 1  ;;  %v242_v46 = vmax.f32 %v240_v59, %v241_v26  ;;  %v1730_v51 = vld [vmem:[%s2348_s2 + $0x150] ss:$28 sps:$4 sm:$0xff]  }
  0xb6   :  { %v463_v18 = vmax.f32 %v461_v55, %v462_v62  ;;  %v254_v21 = vmax.f32 %v252_v12, %v253_v10  ;;  %v324_v24 = vpop.permute.xlu1 %323  ;;  %v320_v25 = vpop.permute.xlu0 %319  ;;  %v249_v27 = vmax.f32 %v247_v60, %v248_v8  ;;  %v440_v47 = vmax.f32 %v438_v43, %v439_v61  ;;  %1670 = vmatpush3.bf16.msra.mxu0 %v1730_v51  ;;  %v1732_v26 = vld [vmem:[%s2348_s2 + $0x4] ss:$28 sps:$4 sm:$0xff]  }
  0xb7   :  { %vm340_vm9 = vcmp.gt.f32.partialorder %v324_v24, 0.0  ;;  %vm339_vm10 = vcmp.gt.f32.partialorder %v320_v25, 0.0  ;;  %v449_v23 = vmax.f32 %v447_v5, %v448_v32  ;;  %v514_v22 = vsel %vm513_vm1, %v2041_v52, %v1973_v13  ;;  %1671 = vmatprep.subr.bf16.mxu0 %v1811_v19  ;;  %1678 = vmatpush3.bf16.msra.mxu1 %v1732_v26 }
  0xb8   :  { %v464_v28 = vrot.slane %v463_v18, 2  ;;  %v255_v29 = vrot.slane %v254_v21, 4  ;;  %v404_v30 = vsel %vm340_vm9, %v356_v14, -1e+09  ;;  %v403_v31 = vsel %vm339_vm10, %v355_v15, -1e+09  ;;  %1679 = vmatprep.subr.bf16.mxu1 %v1811_v19 }
  0xb9   :  { %v250_v33 = vrot.slane %v249_v27, 1  ;;  %v469_v37 = vsel %vm188_vm2, %v404_v30, -inf  ;;  %v468_v35 = vsel %vm188_vm2, %v403_v31, -inf  ;;  %v458_v55 = vmax.f32 %v456_v17, %v457_v36 }
  0xba   :  { %v465_v38 = vmax.f32 %v463_v18, %v464_v28  ;;  %v256_v39 = vmax.f32 %v254_v21, %v255_v29  ;;  %v470_v40 = vmax.f32 %v468_v35, %v469_v37  ;;  %v516_v43 = vsel %vm515_vm6, %v2051_v16, %v514_v22 }
  0xbb   :  { %v251_v54 = vmax.f32 %v249_v27, %v250_v33  ;;  %v495_v56 = vmul.f32 %v2031_v42, %v1966_v6  ;;  %v568_v59 = vsel %vm509_vm11, %v494_v44, %v2014_v11  ;;  %v518_v60 = vsel %vm517_vm7, %v242_v46, %v516_v43  ;;  %v1731_v11 = vld [vmem:[%s2348_s2 + $0x188] ss:$28 sps:$4 sm:$0xff]   ;;  %v1733_v43 = vld [vmem:[%s2348_s2 + $0x3c] ss:$28 sps:$4 sm:$0xff]  }
  0xbc   :  { %v466_v48 = vrot.slane %v465_v38, 1  ;;  %v257_v49 = vrot.slane %v256_v39, 2  ;;  %v471_v50 = vrot.slane %v470_v40, 4  ;;  %v480_v13 = vsub.f32 %v2041_v52, %v440_v47  ;;  %1672 = vmatpush3.bf16.msra.mxu0 %v1731_v11  ;;  %1680 = vmatpush3.bf16.msra.mxu1 %v1733_v43  ;;  %v1771_v43 = vld [vmem:[%s2348_s2 + $0x478] ss:$28 sps:$4 sm:$0xff]  }
  0xbd   :  { %v550_v63 = vsel %vm509_vm11, %v486_v41, %v2019_v20  ;;  %v487_v2 = vand.u32 2147483647, %v479_v53  ;;  %v481_v5 = vsub.f32 %v2051_v16, %v449_v23  ;;  %v520_v6 = vsel %vm519_vm8, %v251_v54, %v518_v60  ;;  %1681 = vmatprep.subr.bf16.mxu1 %v1811_v19  ;;  %v1737_v60 = vld [vmem:[%s2348_s2 + $0x11c] ss:$28 sps:$4 sm:$0xff]  }
  0xbe   :  { %v258_v34 = vmax.f32 %v256_v39, %v257_v49  ;;  %v472_v57 = vmax.f32 %v470_v40, %v471_v50  ;;  %v467_v58 = vmax.f32 %v465_v38, %v466_v48  ;;  %v482_v12 = vsub.f32 %v242_v46, %v458_v55 }
  0xbf   :  { %v496_v14 = vmul.f32 %v440_v47, %v2041_v52  ;;  %v533_v20 = vsel %vm511_vm3, %v2031_v42, %v532_v45  ;;  %v569_v15 = vsel %vm511_vm3, %v495_v56, %v568_v59  ;;  %v488_v18 = vand.u32 2147483647, %v480_v13  ;;  %v1734_v56 = vld [vmem:[%s2348_s2 + $0x74] ss:$28 sps:$4 sm:$0xff]   ;;  %v1736_v59 = vld [vmem:[%s2348_s2 + $0xe4] ss:$28 sps:$4 sm:$0xff]  }
  0xc0   :  { %v259_v61 = vrot.slane %v258_v34, 1  ;;  %v473_v62 = vrot.slane %v472_v57, 2  ;;  %v483_v17 = vsub.f32 %v251_v54, %v467_v58  ;;  %v534_v24 = vsel %vm513_vm1, %v440_v47, %v533_v20  ;;  %1682 = vmatpush3.bf16.msra.mxu1 %v1734_v56  ;;  %v1738_v13 = vld [vmem:[%s2348_s2 + $0x154] ss:$28 sps:$4 sm:$0xff]  }
  0xc1   :  { %v535_v27 = vsel %vm515_vm6, %v449_v23, %v534_v24  ;;  %v497_v52 = vmul.f32 %v449_v23, %v2051_v16  ;;  %v489_v28 = vand.u32 2147483647, %v481_v5  ;;  %v551_v42 = vsel %vm511_vm3, %v487_v2, %v550_v63  ;;  %1683 = vmatprep.subr.bf16.mxu1 %v1811_v19  ;;  %v1739_v63 = vld [vmem:[%s2348_s2 + $0x18c] ss:$28 sps:$4 sm:$0xff]   ;;  %v1745_v2 = vld [vmem:[%s2348_s2 + $0x14] ss:$28 sps:$4 sm:$0xff]  }
  0xc2   :  { %v260_v8 = vmax.f32 %v258_v34, %v259_v61  ;;  %v474_v10 = vmax.f32 %v472_v57, %v473_v62  ;;  %v536_v30 = vsel %vm517_vm7, %v458_v55, %v535_v27  ;;  %v498_v31 = vmul.f32 %v458_v55, %v242_v46  ;;  %v1740_v61 = vld [vmem:[%s2348_s2 + $0x8] ss:$28 sps:$4 sm:$0xff]   ;;  %v1772_v56 = vld [vmem:[%s2348_s2 + $0x2f0] ss:$28 sps:$4 sm:$0xff]  }
  0xc3   :  { %v490_v32 = vand.u32 2147483647, %v482_v12  ;;  %v537_v33 = vsel %vm519_vm8, %v467_v58, %v536_v30  ;;  %v499_v37 = vmul.f32 %v467_v58, %v251_v54  ;;  %v570_v35 = vsel %vm513_vm1, %v496_v14, %v569_v15  ;;  %v1735_v58 = vld [vmem:[%s2348_s2 + $0xac] ss:$28 sps:$4 sm:$0xff]   ;;  %v2155_v5 = vld [vmem:[%s2347_s1 + $0x20] sm:$0xff] }
  0xc4   :  { %v475_v21 = vrot.slane %v474_v10, 1  ;;  %v522_v25 = vsel %vm521_vm12, %v260_v8, %v520_v6  ;;  %v491_v36 = vand.u32 2147483647, %v483_v17  ;;  %v552_v40 = vsel %vm513_vm1, %v488_v18, %v551_v42  ;;  %1684 = vmatpush3.bf16.msra.mxu1 %v1735_v58  ;;  %v1742_v62 = vld [vmem:[%s2348_s2 + $0xc] ss:$28 sps:$4 sm:$0xff]  }
  0xc5   :  { %v571_v41 = vsel %vm515_vm6, %v497_v52, %v570_v35  ;;  %v553_v44 = vsel %vm515_vm6, %v489_v28, %v552_v40  ;;  %vm579_vm11 = vcmask 523264   ;;  %vm581_vm3 = vcmask 785408   ;;  %1685 = vmatprep.subr.bf16.mxu1 %v1811_v19  ;;  %878 = vmatprep.subr.bf16.mxu0 %v1742_v62  ;;  %v1743_v52 = vld [vmem:[%s2348_s2 + $0x10] ss:$28 sps:$4 sm:$0xff]   ;;  %v1746_v28 = vld [vmem:[%s2348_s2 + $0x40] ss:$28 sps:$4 sm:$0xff]  }
  0xc6   :  { %v476_v29 = vmax.f32 %v474_v10, %v475_v21  ;;  %v572_v45 = vsel %vm517_vm7, %v498_v31, %v571_v41  ;;  %v554_v47 = vsel %vm517_vm7, %v490_v32, %v553_v44  ;;  %v603_v6 = vrot.slane %v2155_v5, %v22_v4  ;;  %v1748_v42 = vld [vmem:[%s2348_s2 + $0x44] ss:$28 sps:$4 sm:$0xff]   ;;  %v1751_v30 = vld [vmem:[%s2348_s2 + $0x4c] ss:$28 sps:$4 sm:$0xff]   ;;  %v1752_v32 = vld [vmem:[%s2348_s2 + $0x1d8] ss:$28 sps:$4 sm:$0xff]  }
  0xc7   :  { %v573_v48 = vsel %vm519_vm8, %v499_v37, %v572_v45  ;;  %v555_v49 = vsel %vm519_vm8, %v491_v36, %v554_v47  ;;  %v1816_v31 = vmov 0   ;;  %v721_v37 = vrot.slane %v2155_v5, %v33_v3  ;;  %v1755_v40 = vld [vmem:[%s2348_s2 + $0x398] ss:$28 sps:$4 sm:$0xff]   ;;  %v1756_v3 = vld [vmem:[%s2348_s2 + $0x210] ss:$28 sps:$4 sm:$0xff]  }
  0xc8   :  { %v538_v38 = vsel %vm521_vm12, %v476_v29, %v537_v33  ;;  %v500_v16 = vmul.f32 %v476_v29, %v260_v8  ;;  %v484_v39 = vsub.f32 %v260_v8, %v476_v29  ;;  %1686 = vmatpush3.bf16.msra.mxu1 %v1736_v59  ;;  %v1749_v29 = vld [vmem:[%s2348_s2 + $0x48] ss:$28 sps:$4 sm:$0xff]   ;;  %v1753_v33 = vld [vmem:[%s2348_s2 + $0x558] ss:$28 sps:$4 sm:$0xff]   ;;  %v1757_v45 = vld [vmem:[%s2348_s2 + $0x590] ss:$28 sps:$4 sm:$0xff]  }
  0xc9   :  { %539 = vrot.lane.b32.xlu0 %v538_v38, %s1813_s14  ;;  %1687 = vmatprep.subr.bf16.mxu1 %v1811_v19  ;;  %v1759_v47 = vld [vmem:[%s2348_s2 + $0x3d0] ss:$28 sps:$4 sm:$0xff]   ;;  %v1778_v62 = vld [vmem:[%s2348_s2 + $0x168] ss:$28 sps:$4 sm:$0xff]   ;;  %vm1472_vm15 = vcmask 64560   ;;  %vm1340_vm0 = vcmask 15360  }
  0xca   :  { %v492_v46 = vand.u32 2147483647, %v484_v39  ;;  %v574_v50 = vsel %vm521_vm12, %v500_v16, %v573_v48  ;;  %v1754_v39 = vld [vmem:[%s2348_s2 + $0x18] ss:$28 sps:$4 sm:$0xff]   ;;  %v1760_v48 = vld [vmem:[%s2348_s2 + $0x248] ss:$28 sps:$4 sm:$0xff]  }
  0xcb   :  { %v1773_v58 = vld [vmem:[%s2348_s2 + $0x670] ss:$28 sps:$4 sm:$0xff]   ;;  %vm1369_vm7 = vcmask 7168   ;;  %vm1523_vm8 = vcmask 64512   ;;  %vm1525_vm9 = vcmask 326656   ;;  %vm1527_vm10 = vcmask 392192  }
  0xcc   :  { %v556_v51 = vsel %vm521_vm12, %v492_v46, %v555_v49  ;;  %1688 = vmatpush3.bf16.msra.mxu1 %v1737_v60  ;;  %v1758_v46 = vld [vmem:[%s2348_s2 + $0x50] ss:$28 sps:$4 sm:$0xff]   ;;  %v1761_v49 = vld [vmem:[%s2348_s2 + $0x5c8] ss:$28 sps:$4 sm:$0xff]  }
  0xcd   :  { %575 = vrot.lane.b32.xlu0 %v574_v50, %s1814_s15  ;;  %557 = vrot.lane.b32.xlu1 %v556_v51, %s1815_s16  ;;  %v1762_v50 = vld [vmem:[%s2348_s2 + $0x88] ss:$28 sps:$4 sm:$0xff]   ;;  %v1774_v59 = vld [vmem:[%s2348_s2 + $0x130] ss:$28 sps:$4 sm:$0xff]  }
  0xce   :  { %1689 = vmatprep.subr.bf16.mxu1 %v1811_v19  ;;  %v1763_v51 = vld [vmem:[%s2348_s2 + $0x408] ss:$28 sps:$4 sm:$0xff]   ;;  %v1775_v60 = vld [vmem:[%s2348_s2 + $0x4b0] ss:$28 sps:$4 sm:$0xff]  }
  0xd0   :  { %1690 = vmatpush3.bf16.msra.mxu1 %v1738_v13  ;;  %v1776_v13 = vld [vmem:[%s2348_s2 + $0x328] ss:$28 sps:$4 sm:$0xff]  }
  0xd1   :  { %1691 = vmatprep.subr.bf16.mxu1 %v1811_v19 }
  0xd4   :  { %1692 = vmatpush3.bf16.msra.mxu1 %v1739_v63  ;;  %v1779_v63 = vld [vmem:[%s2348_s2 + $0x4e8] ss:$28 sps:$4 sm:$0xff]  }
  0xd5   :  { %919 = vmatprep.subr.bf16.mxu1 %v1745_v2  ;;  %v1780_v2 = vld [vmem:[%s2348_s2 + $0x360] ss:$28 sps:$4 sm:$0xff]  }
 0x13b   :  { %v540_v53 = vpop.permute.xlu0 %539 }
 0x13c   :  { %v578_v23 = vsel %vm188_vm2, %v522_v25, %v540_v53  ;;  %v1764_v53 = vld [vmem:[%s2348_s2 + $0x280] ss:$28 sps:$4 sm:$0xff]  }
 0x13f   :  { %v576_v54 = vpop.permute.xlu0 %575  ;;  %v558_v22 = vpop.permute.xlu1 %557 }
 0x140   :  { %v580_v55 = vsel %vm579_vm11, %v578_v23, %v558_v22  ;;  %v1765_v23 = vld [vmem:[%s2348_s2 + $0x600] ss:$28 sps:$4 sm:$0xff]  }
 0x141   :  { %v582_v34 = vsel %vm581_vm3, %v580_v55, %v576_v54  ;;  %v1766_v54 = vld [vmem:[%s2348_s2 + $0xc0] ss:$28 sps:$4 sm:$0xff]   ;;  %v1768_v55 = vld [vmem:[%s2348_s2 + $0x2b8] ss:$28 sps:$4 sm:$0xff]  }
 0x142   :  { %v583_v57 = vpack.c.bf16 %v582_v34, %v582_v34  ;;  %v1767_v22 = vld [vmem:[%s2348_s2 + $0x440] ss:$28 sps:$4 sm:$0xff]   ;;  %v1769_v34 = vld [vmem:[%s2348_s2 + $0x638] ss:$28 sps:$4 sm:$0xff]  }
 0x144   :  { %1674 = vmatmul.mubr.bf16.vlgmr.msra.gmra.mrb[0].mxu0 %v583_v57  ;;  %v1770_v57 = vld [vmem:[%s2348_s2 + $0xf8] ss:$28 sps:$4 sm:$0xff]  }
 0x145   :  { %879 = vmatpush1.bf16.msra.mxu0 %v1740_v61  ;;  %910 = vmatprep.mubr.bf16.mxu0 %v1816_v31  ;;  %v1777_v61 = vld [vmem:[%s2348_s2 + $0x6a8] ss:$28 sps:$4 sm:$0xff]  }
 0x146   :  { %880 = vmatprep.subr.bf16.mxu0 %v1748_v42 }
 0x149   :  { %881 = vmatpush1.bf16.msra.mxu0 %v1746_v28 }
 0x14a   :  { %1613 = vmatprep.subr.bf16.mxu0 %v1752_v32 }
 0x217   :  { %v686_v11 = vpop.f32.mrb[0].mxu0 }
 0x218   :  { %v687_v8 = vadd.f32 %v686_v11, %v603_v6  ;;  %v1675_v10 = vpop.f32.mrb[1].mxu0  ;;  %v1781_v6 = vld [vmem:[%s2348_s2 + $0x6e0] ss:$28 sps:$4 sm:$0xff]  }
 0x219   :  { %v689_v12 = vpop.f32.mrb[2].mxu0  ;;  %v1782_v11 = vld [vmem:[%s2348_s2 + $0x1a0] ss:$28 sps:$4 sm:$0xff]   ;;  %v18_v10 = vld [vmem:[%s2347_s1 + $0x30] sm:$0xff] }
 0x21a   :  { %v694_v14 = vmul.f32 0.044715, %v687_v8  ;;  %v1676_v20 = vpop.f32.mrb[3].mxu0  ;;  %v693_v17 = vmul.f32 0.7978846, %v687_v8  ;;  %v692_v25 = vmul.f32 0.5, %v687_v8 }
 0x21b   :  { %v17_v12 = vld [vmem:[%s2347_s1 + $0x28] sm:$0xff]  ;;  %v822_v20 = vrot.slane %v2155_v5, %v1858_v7 }
 0x21c   :  { %v695_v15 = vmul.f32 %v694_v14, %v687_v8  ;;  %v1783_v8 = vld [vmem:[%s2348_s2 + $0x520] ss:$28 sps:$4 sm:$0xff]   ;;  %s1817_s2 = smov 124  }
 0x21d   :  { %v19_v14 = vld [vmem:[%s2347_s1 + $0x38] sm:$0xff] }
 0x21e   :  { %v696_v18 = vadd.f32 1.0, %v695_v15  ;;  %v830_v15 = vrot.slane %v18_v10, %v1858_v7 }
 0x220   :  { %v697_v21 = vmul.f32 %v696_v18, %v693_v17  ;;  %v826_v17 = vrot.slane %v17_v12, %v1858_v7  ;;  %v834_v18 = vrot.slane %v19_v14, %v1858_v7  ;;  %v1067_v14 = vrot.slane %v2155_v5, %v55_v9 }
 0x222   :  { %1784 = vtanh.f32 %v697_v21 }
 0x22c   :  { %v1785_v24 = vpop.eup %1784 }
 0x22d   :  { %v699_v26 = vadd.f32 1.0, %v1785_v24 }
 0x22f   :  { %v700_v27 = vmul.f32 %v699_v26, %v692_v25 }
 0x231   :  { %v701_v4 = vpack.c.bf16 %v700_v27, %v700_v27 }
 0x233   :  { %1694 = vmatmul.mubr.bf16.vlgmr.msra.gmra.mrb[0].mxu1 %v701_v4 }
 0x234   :  { %920 = vmatpush1.bf16.msra.mxu1 %v1743_v52  ;;  %951 = vmatprep.mubr.bf16.mxu1 %v1816_v31 }
 0x235   :  { %921 = vmatprep.subr.bf16.mxu1 %v1751_v30 }
 0x238   :  { %922 = vmatpush1.bf16.msra.mxu1 %v1749_v29 }
 0x239   :  { %1635 = vmatprep.subr.bf16.mxu1 %v1753_v33 }
 0x306   :  { %v804_v35 = vpop.f32.mrb[0].mxu1 }
 0x307   :  { %v2184_v36 = vadd.f32 %v804_v35, %v721_v37  ;;  %v1695_v38 = vpop.f32.mrb[1].mxu1 }
 0x308   :  { %v807_v16 = vpop.f32.mrb[2].mxu1 }
 0x309   :  { %v810_v41 = vpack.c.bf16 %v2184_v36, %v2184_v36  ;;  %v1696_v44 = vpop.f32.mrb[3].mxu1 }
 0x30b   :  { %1557 = vmatmul.mubr.msk.bf16.vlgmr.msra.gmra.mrb[4].mxu0 %vm188_vm2, %v810_v41  ;;  %1558 = vmatmul.mubr.msk.bf16.vlgmr.msra.gmra.mrb[4].mxu1 %vm188_vm2, %v810_v41  ;;  %vm1427_vm2 = vcmask 48160  }
 0x30c   :  { %1614 = vmatpush3.bf16.msra.mxu0 %v1754_v39  ;;  %1636 = vmatpush3.bf16.msra.mxu1 %v1755_v40 }
 0x30d   :  { %1615 = vmatprep.subr.bf16.mxu0 %v1756_v3  ;;  %1637 = vmatprep.subr.bf16.mxu1 %v1757_v45 }
 0x310   :  { %1616 = vmatpush3.bf16.msra.mxu0 %v1758_v46  ;;  %1638 = vmatpush3.bf16.msra.mxu1 %v1759_v47 }
 0x311   :  { %1617 = vmatprep.subr.bf16.mxu0 %v1760_v48  ;;  %1639 = vmatprep.subr.bf16.mxu1 %v1761_v49 }
 0x314   :  { %1618 = vmatpush3.bf16.msra.mxu0 %v1762_v50  ;;  %1640 = vmatpush3.bf16.msra.mxu1 %v1763_v51 }
 0x315   :  { %1619 = vmatprep.subr.bf16.mxu0 %v1764_v53  ;;  %1641 = vmatprep.subr.bf16.mxu1 %v1765_v23 }
 0x318   :  { %1620 = vmatpush3.bf16.msra.mxu0 %v1766_v54  ;;  %1642 = vmatpush3.bf16.msra.mxu1 %v1767_v22 }
 0x319   :  { %1621 = vmatprep.subr.bf16.mxu0 %v1768_v55  ;;  %1643 = vmatprep.subr.bf16.mxu1 %v1769_v34 }
 0x31c   :  { %1622 = vmatpush3.bf16.msra.mxu0 %v1770_v57  ;;  %1644 = vmatpush3.bf16.msra.mxu1 %v1771_v43 }
 0x31d   :  { %1623 = vmatprep.subr.bf16.mxu0 %v1772_v56  ;;  %1645 = vmatprep.subr.bf16.mxu1 %v1773_v58 }
 0x320   :  { %1624 = vmatpush3.bf16.msra.mxu0 %v1774_v59  ;;  %1646 = vmatpush3.bf16.msra.mxu1 %v1775_v60 }
 0x321   :  { %1625 = vmatprep.subr.bf16.mxu0 %v1776_v13  ;;  %1647 = vmatprep.subr.bf16.mxu1 %v1777_v61 }
 0x324   :  { %1626 = vmatpush3.bf16.msra.mxu0 %v1778_v62  ;;  %1648 = vmatpush3.bf16.msra.mxu1 %v1779_v63 }
 0x325   :  { %1627 = vmatprep.subr.bf16.mxu0 %v1780_v2  ;;  %1649 = vmatprep.subr.bf16.mxu1 %v1781_v6 }
 0x328   :  { %1628 = vmatpush3.bf16.msra.mxu0 %v1782_v11  ;;  %1650 = vmatpush3.bf16.msra.mxu1 %v1783_v8 }
 0x3de   :  { %v912_v21 = vpop.f32.mrb[4].mxu0  ;;  %v953_v24 = vpop.f32.mrb[4].mxu1 }
 0x3df   :  { %v913_v25 = vadd.f32 %v912_v21, %v822_v20  ;;  %v954_v26 = vadd.f32 %v953_v24, %v830_v15  ;;  %v914_v27 = vpop.f32.mrb[5].mxu0  ;;  %v955_v52 = vpop.f32.mrb[5].mxu1 }
 0x3e0   :  { %v915_v4 = vadd.f32 %v914_v27, %v826_v17  ;;  %v956_v28 = vadd.f32 %v955_v52, %v834_v18  ;;  %v916_v42 = vpop.f32.mrb[6].mxu0  ;;  %v957_v29 = vpop.f32.mrb[6].mxu1 }
 0x3e1   :  { %v968_v30 = vmul.f32 0.044715, %v913_v25  ;;  %v970_v31 = vmul.f32 0.044715, %v954_v26  ;;  %v917_v38 = vpop.f32.mrb[7].mxu0  ;;  %v958_v16 = vpop.f32.mrb[7].mxu1 }
 0x3e2   :  { %v969_v33 = vmul.f32 0.044715, %v915_v4  ;;  %v971_v37 = vmul.f32 0.044715, %v956_v28  ;;  %v964_v39 = vmul.f32 0.7978846, %v913_v25 }
 0x3e3   :  { %v972_v32 = vmul.f32 %v968_v30, %v913_v25  ;;  %v974_v35 = vmul.f32 %v970_v31, %v954_v26  ;;  %v966_v44 = vmul.f32 0.7978846, %v954_v26  ;;  %v965_v45 = vmul.f32 0.7978846, %v915_v4 }
 0x3e4   :  { %v973_v40 = vmul.f32 %v969_v33, %v915_v4  ;;  %v975_v41 = vmul.f32 %v971_v37, %v956_v28  ;;  %v967_v48 = vmul.f32 0.7978846, %v956_v28  ;;  %v960_v34 = vmul.f32 0.5, %v913_v25 }
 0x3e5   :  { %v976_v7 = vadd.f32 1.0, %v972_v32  ;;  %v978_v3 = vadd.f32 1.0, %v974_v35  ;;  %v962_v56 = vmul.f32 0.5, %v954_v26  ;;  %v961_v58 = vmul.f32 0.5, %v915_v4 }
 0x3e6   :  { %v977_v47 = vadd.f32 1.0, %v973_v40  ;;  %v979_v49 = vadd.f32 1.0, %v975_v41  ;;  %v963_v60 = vmul.f32 0.5, %v956_v28  ;;  %v1820_v40 = vmov 32  }
 0x3e7   :  { %v980_v46 = vmul.f32 %v976_v7, %v964_v39  ;;  %v982_v50 = vmul.f32 %v978_v3, %v966_v44  ;;  %1719 = vset.pattern.permute.xlu1 %v1820_v40 }
 0x3e8   :  { %v981_v51 = vmul.f32 %v977_v47, %v965_v45  ;;  %v983_v53 = vmul.f32 %v979_v49, %v967_v48  ;;  %v1810_v48 = vld [vmem:[%s2347_s1] sm:$0xff]  ;;  %v1821_v49 = vmov 34   ;;  %s1824_s1 = smov 8  }
 0x3e9   :  { %1786 = vtanh.f32 %v980_v46 }
 0x3ea   :  { %1788 = vtanh.f32 %v982_v50  ;;  %v1822_v50 = vmov 33  }
 0x3eb   :  { %1790 = vtanh.f32 %v981_v51  ;;  %1720 = vset.pattern.permute.xlu0 %v1822_v50  ;;  %v1823_v51 = vmov 35  }
 0x3ec   :  { %1792 = vtanh.f32 %v983_v53 }
 0x3f3   :  { %v1787_v23 = vpop.eup %1786 }
 0x3f4   :  { %v1789_v54 = vpop.eup %1788  ;;  %v988_v22 = vadd.f32 1.0, %v1787_v23 }
 0x3f5   :  { %v1791_v55 = vpop.eup %1790  ;;  %v990_v57 = vadd.f32 1.0, %v1789_v54 }
 0x3f6   :  { %v1793_v43 = vpop.eup %1792  ;;  %v989_v59 = vadd.f32 1.0, %v1791_v55  ;;  %v992_v61 = vmul.f32 %v988_v22, %v960_v34 }
 0x3f7   :  { %v991_v13 = vadd.f32 1.0, %v1793_v43  ;;  %v994_v63 = vmul.f32 %v990_v57, %v962_v56 }
 0x3f8   :  { %v993_v62 = vmul.f32 %v989_v59, %v961_v58  ;;  %v996_v8 = vpack.c.bf16 %v992_v61, %v992_v61 }
 0x3f9   :  { %v995_v2 = vmul.f32 %v991_v13, %v963_v60  ;;  %v998_v10 = vpack.c.bf16 %v994_v63, %v994_v63 }
 0x3fa   :  { %v997_v6 = vpack.c.bf16 %v993_v62, %v993_v62 }
 0x3fb   :  { %v999_v11 = vpack.c.bf16 %v995_v2, %v995_v2 }
 0x3fc   :  { %1292 = vmatprep.mubr.bf16.mxu0 %v997_v6 }
 0x3fd   :  { %1332 = vmatprep.mubr.bf16.mxu1 %v999_v11  ;;  %1293 = vmatmul.mubr.bf16.vlgmr.msra.gmra.mrb[8].mxu0 %v996_v8 }
 0x3fe   :  { %1333 = vmatmul.mubr.bf16.vlgmr.msra.gmra.mrb[8].mxu1 %v998_v10 }
 0x4d0   :  { %v1629_v12 = vpop.f32.mrb[8].mxu0 }
 0x4d1   :  { %v1651_v20 = vpop.f32.mrb[8].mxu1  ;;  %v1630_v15 = vpop.f32.mrb[9].mxu0 }
 0x4d2   :  { %v1631_v17 = vadd.f32 %v1630_v15, %v1629_v12  ;;  %v1652_v18 = vpop.f32.mrb[9].mxu1  ;;  %v1632_v21 = vpop.f32.mrb[10].mxu0  ;;  %v1354_v12 = vand.u32 127, %v20_v0 }
 0x4d3   :  { %v1653_v24 = vadd.f32 %v1652_v18, %v1651_v20  ;;  %v1654_v25 = vpop.f32.mrb[10].mxu1  ;;  %v1633_v26 = vpop.f32.mrb[11].mxu0 }
 0x4d4   :  { %v1295_v27 = vadd.f32 %v1631_v17, %v1067_v14  ;;  %v1655_v52 = vpop.f32.mrb[11].mxu1  ;;  %v1355_v14 = vcvt.s32.f32 %v1354_v12 }
 0x4d6   :  { %v2297_v4 = vadd.f32 %v1653_v24, %v1295_v27 }
 0x4d8   :  { %v1428_v28 = vsel %vm1427_vm2, %v2297_v4, -inf  ;;  %v1383_v1 = vsel %vm1382_vm14, %v2297_v4, -inf  ;;  %v1473_v9 = vsel %vm1472_vm15, %v2297_v4, -inf  ;;  %v1341_v7 = vsel %vm1340_vm0, %v2297_v4, -inf }
 0x4d9   :  { %1429 = vmax.xlane.f32.xlu0 %v1428_v28  ;;  %1384 = vmax.xlane.f32.xlu1 %v1383_v1 }
 0x4dd   :  { %1474 = vmax.xlane.f32.xlu0 %v1473_v9 }
 0x566   :  { %v2302_v5 = vpop.xlane.xlu0 %1429  ;;  %v1385_v42 = vpop.xlane.xlu1 %1384 }
 0x567   :  { %v1431_v29 = vsub.f32 %v2297_v4, %v2302_v5  ;;  %v1386_v30 = vsub.f32 %v2297_v4, %v1385_v42 }
 0x569   :  { %v1432_v31 = vmul.f32 1.442695, %v1431_v29  ;;  %v1387_v32 = vmul.f32 1.442695, %v1386_v30 }
 0x56a   :  { %v2307_v33 = vpop.xlane.xlu0 %1474 }
 0x56b   :  { %1794 = vpow2.f32 %v1432_v31  ;;  %v1476_v37 = vsub.f32 %v2297_v4, %v2307_v33 }
 0x56c   :  { %1796 = vpow2.f32 %v1387_v32 }
 0x56d   :  { %v1477_v35 = vmul.f32 1.442695, %v1476_v37 }
 0x56f   :  { %1798 = vpow2.f32 %v1477_v35 }
 0x575   :  { %v1795_v38 = vpop.eup %1794 }
 0x576   :  { %v1797_v16 = vpop.eup %1796  ;;  %1435 = vrot.lane.b32.xlu0 %v1795_v38, %s1817_s2 }
 0x577   :  { %1390 = vrot.lane.b32.xlu1 %v1797_v16, %s1818_s8 }
 0x579   :  { %v1799_v39 = vpop.eup %1798 }
 0x57b   :  { %1480 = vrot.lane.b32.xlu1 %v1799_v39, %s1819_s0 }
 0x59f   :  { %1342 = vmax.xlane.f32.xlu1 %v1341_v7 }
 0x5e8   :  { %v1436_v3 = vpop.permute.xlu0 %1435 }
 0x5e9   :  { %v1391_v41 = vpop.permute.xlu1 %1390  ;;  %v1438_v46 = vsel %vm1340_vm0, %v1436_v3, 0.0 }
 0x5ea   :  { %v1393_v44 = vsel %vm1340_vm0, %v1391_v41, 0.0 }
 0x5eb   :  { %1394 = vadd.xlane.f32.xlu0 %v1393_v44 }
 0x5ed   :  { %v1481_v45 = vpop.permute.xlu1 %1480 }
 0x5ee   :  { %v1483_v47 = vsel %vm1340_vm0, %v1481_v45, 0.0 }
 0x5ef   :  { %1439 = vadd.xlane.f32.xlu0 %v1438_v46  ;;  %1484 = vadd.xlane.f32.xlu1 %v1483_v47 }
 0x600   :  { %1358 = vperm.xlu1 %1719, %v1810_v48  }
 0x604   :  { %1721 = vset.pattern.permute.xlu1 %v1821_v49 }
 0x605   :  { %1445 = vperm.xlu1 %1721, %v1810_v48  }
 0x609   :  { %1722 = vset.pattern.permute.xlu1 %v1823_v51 }
 0x60a   :  { %1490 = vperm.xlu1 %1722, %v1810_v48  }
 0x62c   :  { %v1343_v53 = vpop.xlane.xlu1 %1342 }
 0x62d   :  { %v1344_v23 = vsub.f32 %v2297_v4, %v1343_v53 }
 0x62f   :  { %v1345_v54 = vmul.f32 1.442695, %v1344_v23 }
 0x631   :  { %1800 = vpow2.f32 %v1345_v54 }
 0x63b   :  { %v1801_v22 = vpop.eup %1800 }
 0x63c   :  { %v1347_v55 = vsel %vm1340_vm0, %v1801_v22, 0.0 }
 0x63d   :  { %1348 = vadd.xlane.f32.xlu0 %v1347_v55 }
 0x653   :  { %1400 = vperm.xlu0 %1720, %v1810_v48  }
 0x657   :  { %1723 = vset.pattern.permute.xlu0 %v1823_v51 }
 0x678   :  { %v1395_v34 = vpop.xlane.xlu0 %1394 }
 0x679   :  { %1802 = vlog2.f32 %v1395_v34 }
 0x67c   :  { %v1440_v57 = vpop.xlane.xlu0 %1439  ;;  %v1485_v43 = vpop.xlane.xlu1 %1484 }
 0x67d   :  { %1804 = vlog2.f32 %v1440_v57 }
 0x67e   :  { %1806 = vlog2.f32 %v1485_v43 }
 0x680   :  { %v1359_v20 = vpop.permute.xlu1 %1358 }
 0x681   :  { %vm1361_vm1 = vcmp.eq.f32.partialorder %v1355_v14, %v1359_v20 }
 0x682   :  { %v1591_v21 = vsel %vm1361_vm1, 1.0, %v1811_v19 }
 0x683   :  { %v1803_v56 = vpop.eup %1802 }
 0x684   :  { %v1397_v58 = vmul.f32 0.6931472, %v1803_v56  ;;  %v1446_v27 = vpop.permute.xlu1 %1445 }
 0x685   :  { %vm1448_vm5 = vcmp.eq.f32.partialorder %v1355_v14, %v1446_v27 }
 0x686   :  { %v1398_v59 = vadd.f32 %v1397_v58, %v1385_v42  ;;  %v1593_v42 = vsel %vm1448_vm5, 1.0, %v1811_v19 }
 0x687   :  { %v1805_v60 = vpop.eup %1804 }
 0x688   :  { %v1807_v13 = vpop.eup %1806  ;;  %v1442_v61 = vmul.f32 0.6931472, %v1805_v60  ;;  %v1406_v62 = vsub.f32 %v1398_v59, %v2297_v4 }
 0x689   :  { %v1487_v63 = vmul.f32 0.6931472, %v1807_v13  ;;  %v1491_v28 = vpop.permute.xlu1 %1490 }
 0x68a   :  { %v1443_v2 = vadd.f32 %v1442_v61, %v2302_v5  ;;  %1408 = vrot.lane.b32.xlu1 %v1406_v62, %s1818_s8  ;;  %vm1493_vm6 = vcmp.eq.f32.partialorder %v1355_v14, %v1491_v28 }
 0x68b   :  { %v1488_v6 = vadd.f32 %v1487_v63, %v2307_v33  ;;  %v1594_v32 = vsel %vm1493_vm6, 1.0, %v1811_v19 }
 0x68c   :  { %v1451_v11 = vsub.f32 %v1443_v2, %v2297_v4 }
 0x68d   :  { %v1496_v8 = vsub.f32 %v1488_v6, %v2297_v4 }
 0x68e   :  { %1453 = vrot.lane.b32.xlu1 %v1451_v11, %s1817_s2 }
 0x692   :  { %1498 = vrot.lane.b32.xlu1 %v1496_v8, %s1819_s0 }
 0x6ca   :  { %v1349_v10 = vpop.xlane.xlu0 %1348 }
 0x6cb   :  { %1808 = vlog2.f32 %v1349_v10 }
 0x6d2   :  { %v1401_v52 = vpop.permute.xlu0 %1400 }
 0x6d3   :  { %vm1403_vm4 = vcmp.eq.f32.partialorder %v1355_v14, %v1401_v52 }
 0x6d4   :  { %v1592_v0 = vsel %vm1403_vm4, 1.0, %v1811_v19 }
 0x6d5   :  { %v1809_v15 = vpop.eup %1808 }
 0x6d6   :  { %v1351_v17 = vmul.f32 0.6931472, %v1809_v15 }
 0x6d8   :  { %v1352_v18 = vadd.f32 %v1351_v17, %v1343_v53 }
 0x6da   :  { %v1364_v24 = vsub.f32 %v1352_v18, %v2297_v4 }
 0x6dc   :  { %v1365_v25 = vmul.f32 %v1591_v21, %v1364_v24 }
 0x6de   :  { %v1366_v26 = vsel %vm1340_vm0, %v1365_v25, 0.0 }
 0x6df   :  { %1367 = vadd.xlane.f32.xlu1 %v1366_v26 }
 0x6fc   :  { %v1409_v1 = vpop.permute.xlu1 %1408 }
 0x6fd   :  { %v1411_v9 = vmul.f32 %v1592_v0, %v1409_v1 }
 0x6ff   :  { %v1412_v5 = vsel %vm1340_vm0, %v1411_v9, 0.0 }
 0x700   :  { %1413 = vadd.xlane.f32.xlu0 %v1412_v5  ;;  %v1454_v29 = vpop.permute.xlu1 %1453 }
 0x701   :  { %v1456_v30 = vmul.f32 %v1593_v42, %v1454_v29 }
 0x703   :  { %v1457_v31 = vsel %vm1340_vm0, %v1456_v30, 0.0 }
 0x704   :  { %1458 = vadd.xlane.f32.xlu1 %v1457_v31  ;;  %v1499_v33 = vpop.permute.xlu1 %1498 }
 0x705   :  { %v1501_v37 = vmul.f32 %v1594_v32, %v1499_v33 }
 0x707   :  { %v1502_v35 = vsel %vm1340_vm0, %v1501_v37, 0.0 }
 0x708   :  { %1503 = vadd.xlane.f32.xlu1 %v1502_v35 }
 0x76c   :  { %v1368_v38 = vpop.xlane.xlu1 %1367 }
 0x76d   :  { %v1370_v16 = vsel %vm1369_vm7, %v1368_v38, 0.0 }
 0x76e   :  { %1371 = vadd.xlane.f32.xlu0 %v1370_v16 }
 0x78d   :  { %v1414_v39 = vpop.xlane.xlu0 %1413 }
 0x78e   :  { %v1415_v7 = vsel %vm1369_vm7, %v1414_v39, 0.0 }
 0x78f   :  { %1416 = vadd.xlane.f32.xlu1 %v1415_v7 }
 0x791   :  { %v1459_v40 = vpop.xlane.xlu1 %1458 }
 0x792   :  { %v1460_v41 = vsel %vm1369_vm7, %v1459_v40, 0.0 }
 0x793   :  { %1461 = vadd.xlane.f32.xlu0 %v1460_v41 }
 0x795   :  { %v1504_v44 = vpop.xlane.xlu1 %1503 }
 0x796   :  { %v1505_v3 = vsel %vm1369_vm7, %v1504_v44, 0.0 }
 0x797   :  { %1506 = vadd.xlane.f32.xlu1 %v1505_v3 }
 0x7a9   :  { %1520 = vrot.lane.b32.xlu0 %v2184_v36, %s1824_s1 }
 0x7fb   :  { %v1372_v19 = vpop.xlane.xlu0 %1371 }
 0x7fc   :  { %v1373_v45 = vrot.slane %v1372_v19, 4 }
 0x7fe   :  { %v1374_v46 = vadd.f32 %v1373_v45, %v1372_v19 }
 0x800   :  { %v1375_v47 = vrot.slane %v1374_v46, 2 }
 0x802   :  { %v1376_v48 = vadd.f32 %v1375_v47, %v1374_v46 }
 0x804   :  { %v1377_v49 = vrot.slane %v1376_v48, 1 }
 0x806   :  { %v1378_v50 = vadd.f32 %v1377_v49, %v1376_v48 }
 0x808   :  { %1697 = vpush %v1378_v50 }
 0x81c   :  { %v1417_v51 = vpop.xlane.xlu1 %1416 }
 0x81d   :  { %v1418_v53 = vrot.slane %v1417_v51, 4 }
 0x81f   :  { %v1419_v23 = vadd.f32 %v1418_v53, %v1417_v51 }
 0x820   :  { %v1462_v54 = vpop.xlane.xlu0 %1461 }
 0x821   :  { %v1420_v22 = vrot.slane %v1419_v23, 2  ;;  %v1463_v55 = vrot.slane %v1462_v54, 4 }
 0x823   :  { %v1464_v34 = vadd.f32 %v1463_v55, %v1462_v54  ;;  %v1421_v57 = vadd.f32 %v1420_v22, %v1419_v23 }
 0x824   :  { %v1507_v43 = vpop.xlane.xlu1 %1506  ;;  %v1521_v8 = vpop.permute.xlu0 %1520 }
 0x825   :  { %v1465_v56 = vrot.slane %v1464_v34, 2  ;;  %v1508_v58 = vrot.slane %v1507_v43, 4  ;;  %v1422_v36 = vrot.slane %v1421_v57, 1  ;;  %v1524_v10 = vsel %vm1523_vm8, %v2297_v4, %v1521_v8 }
 0x827   :  { %v1509_v59 = vadd.f32 %v1508_v58, %v1507_v43  ;;  %v1423_v60 = vadd.f32 %v1422_v36, %v1421_v57  ;;  %v1466_v13 = vadd.f32 %v1465_v56, %v1464_v34 }
 0x829   :  { %v1510_v61 = vrot.slane %v1509_v59, 2  ;;  %1699 = vpush %v1423_v60  ;;  %v1467_v62 = vrot.slane %v1466_v13, 1 }
 0x82b   :  { %v1511_v63 = vadd.f32 %v1510_v61, %v1509_v59  ;;  %v1468_v2 = vadd.f32 %v1467_v62, %v1466_v13 }
 0x82d   :  { %1701 = vpush %v1468_v2  ;;  %v1512_v6 = vrot.slane %v1511_v63, 1 }
 0x82f   :  { %v1513_v11 = vadd.f32 %v1512_v6, %v1511_v63 }
 0x831   :  { %1703 = vpush %v1513_v11 }
 0x839   :  { %s1698_s11 = spop %1697 }
 0x83a   :  { %s1380_s14 = smul.f32 0.125, %s1698_s11 }
 0x85a   :  { %s1700_s12 = spop %1699 }
 0x85b   :  { %s1425_s13 = smul.f32 0.125, %s1700_s12 }
 0x85d   :  { %s1426_s17 = sadd.f32 %s1425_s13, %s1380_s14 }
 0x85e   :  { %s1702_s15 = spop %1701 }
 0x85f   :  { %s1470_s16 = smul.f32 0.125, %s1702_s15 }
 0x861   :  { %s1471_s19 = sadd.f32 %s1470_s16, %s1426_s17 }
 0x862   :  { %s1704_s18 = spop %1703 }
 0x863   :  { %s1515_s20 = smul.f32 0.125, %s1704_s18 }
 0x865   :  { %s1516_s21 = sadd.f32 %s1515_s20, %s1471_s19 }
 0x867   :  { %v1517_v12 = vstv %s1516_s21 }
 0x868   :  { %v1526_v14 = vsel %vm1525_vm9, %v1524_v10, %v1517_v12 }
 0x869   :  { %1528 = vst.msk [vmem:[%s2350_s3] sm:$0xff] %vm1527_vm10, %v1526_v14 }

</bundles_post_ra>
